<compile_context>
chip_gen: v7x
topology: tpu7x:2x2x1
jax: 0.10.0
libtpu: 0.0.40
codegen_flags: <defaults>
</compile_context>

<pallas_src>
import jax
import jax.numpy as jnp
from jax.experimental import pallas as pl
from jax.experimental.pallas import tpu as pltpu


def _additive_attention_kernel(f_ref, hp_ref, wf_ref, v_ref, ctx_ref, w_ref):
    # f_ref  : (TB*L, F) flattened features block (compute dtype: f32 or bf16)
    # hp_ref : (TB, H)   precomputed hidden @ Wh + b (f32)
    # wf_ref : (F, H)    feature half of the concat-linear weight (compute dtype)
    # v_ref  : (1, H)    scoring vector (f32)
    # ctx_ref: (TB, F)   context output (lane-dense row block)
    # w_ref  : (TB, L)   attention-weights output (lane-dense row block)
    F = f_ref.shape[1]
    tb, H = hp_ref.shape
    L = w_ref.shape[1]

    feats = f_ref[...]                                           # (TB*L, F)

    # Energy: one (TB*L, F) @ (F, H) MXU matmul with f32 accumulation.
    proj = jnp.dot(feats, wf_ref[...], preferred_element_type=jnp.float32)

    # Regroup rows into (TB, L, H).  Free (pure sublane regrouping) when
    # L % 8 == 0; TB % 8 == 0 is enforced by the wrapper.
    # TODO(synk): for L % 8 != 0 this regroup relayouts; a segmented flat
    # formulation (or bf16 tanh on v6e/v7x) would be the next optimization.
    e = jnp.tanh(proj.reshape(tb, L, H) + hp_ref[...][:, None, :])   # f32

    # Scores: contract H (lane axis) against v -> (TB, L), lane-dense.
    scores = jnp.sum(e * v_ref[...][None, :, :], axis=2)

    # Softmax over the sequence axis; approx reciprocal runs on the EUP slot.
    m = jnp.max(scores, axis=1, keepdims=True)
    p = jnp.exp(scores - m)
    w = p * pl.reciprocal(jnp.sum(p, axis=1, keepdims=True), approx=True)

    # Context: VPU multiply + cross-sublane (XLU) sum over L.  This replaces
    # the old M=1 batched MXU einsum that serialized TB weight pushes.
    feats3 = feats.reshape(tb, L, F).astype(jnp.float32)
    ctx = jnp.sum(feats3 * w[:, :, None], axis=1)                # (TB, F) f32

    ctx_ref[...] = ctx.astype(ctx_ref.dtype)
    w_ref[...] = w.astype(w_ref.dtype)


def _choose_block_b(B, L, F, itemsize):
    """Per-step batch-tile size.

    Constraints from the perf review:
      * tb % 8 == 0 (full-sublane input/output blocks) or tb == B,
      * features block tb*L*F*itemsize kept within ~2 MiB per pipeline buffer,
      * >= 2 grid steps (preferably an even count) so the 'parallel' grid axis
        can shard across v7x's 2 TensorCores,
      * a hard cap on tb to bound per-step vreg / VPU pressure.
    """
    aligned = [d for d in range(8, B + 1, 8) if B % d == 0]
    if not aligned:
        return B                            # tiny batch: one full-batch block
    row_bytes = L * F * itemsize
    max_block_bytes = 2 << 20               # ~2 MiB features block per buffer
    hard_cap = 512
    fitting = [d for d in aligned
               if d <= hard_cap and d * row_bytes <= max_block_bytes]
    cands = fitting or [aligned[0]]         # at worst one 8-row tile
    multi = [d for d in cands if B // d >= 2]
    pool = multi or cands
    even = [d for d in pool if (B // d) % 2 == 0]
    return max(even or pool)


def additive_attention(features, hidden, w_attn, b_attn, v_weight,
                       *, block_b=None, compute_dtype=jnp.bfloat16):
    """Pallas implementation of AdditiveAttention.forward.

    features : (B, L, F) float32
    hidden   : (B, H)    float32
    w_attn   : (H, F+H)  float32  -- PyTorch nn.Linear(F+H, H).weight
    b_attn   : (H,)      float32  -- PyTorch nn.Linear(F+H, H).bias
    v_weight : (1, H)    float32  -- PyTorch nn.Linear(H, 1, bias=False).weight
    compute_dtype: dtype of the features stream / Wf MXU operands (bf16 by
                   default: halves HBM traffic; all elementwise math is f32).
    """
    B, L, F = features.shape
    H = hidden.shape[1]

    # Split the concat-linear: feature half stays in the kernel (MXU), hidden
    # half (plus bias) is hoisted to ONE XLA matmul over the whole batch.
    wf = jnp.transpose(w_attn[:, :F]).astype(compute_dtype)               # (F, H)
    hproj = (hidden @ jnp.transpose(w_attn[:, F:])
             + b_attn[None, :]).astype(jnp.float32)                       # (B, H)
    v2 = v_weight.reshape(1, H).astype(jnp.float32)                       # (1, H)

    # Features pre-flattened to (B*L, F): clean (8,128)-tileable 2D blocks,
    # no per-batch L padding, no relayout of the DMA'd tile.
    feats_flat = features.reshape(B * L, F).astype(compute_dtype)

    itemsize = jnp.dtype(compute_dtype).itemsize
    tb = block_b if block_b is not None else _choose_block_b(B, L, F, itemsize)
    if B % tb != 0:
        raise ValueError(f"block_b={tb} must divide B={B}")
    grid = (B // tb,)

    def build(single_buffer_invariants):
        inv_kw = ({"pipeline_mode": pl.Buffered(1)}
                  if single_buffer_invariants else {})
        return pl.pallas_call(
            _additive_attention_kernel,
            out_shape=(
                jax.ShapeDtypeStruct((B, F), jnp.float32),
                jax.ShapeDtypeStruct((B, L), jnp.float32),
            ),
            grid_spec=pltpu.PrefetchScalarGridSpec(
                num_scalar_prefetch=0,
                grid=grid,
                in_specs=[
                    pl.BlockSpec((tb * L, F), lambda b: (b, 0)),   # features (flat)
                    pl.BlockSpec((tb, H), lambda b: (b, 0)),       # hidden @ Wh + b
                    pl.BlockSpec((F, H), lambda b: (0, 0), **inv_kw),  # Wf (invariant)
                    pl.BlockSpec((1, H), lambda b: (0, 0), **inv_kw),  # v  (invariant)
                ],
                out_specs=[
                    pl.BlockSpec((tb, F), lambda b: (b, 0)),       # context
                    pl.BlockSpec((tb, L), lambda b: (b, 0)),       # weights
                ],
            ),
            compiler_params=pltpu.CompilerParams(
                dimension_semantics=("parallel",),
                # Explicit, generation-safe scoped-VMEM budget: above v5e's
                # 16 MiB default, below v7x's 64 MiB per-core physical.
                vmem_limit_bytes=48 * 1024 * 1024,
            ),
        )

    try:
        ctx, w = build(True)(feats_flat, hproj, wf, v2)
    except Exception:
        # pl.Buffered(1) on the grid-invariant operands is only a VMEM-saving
        # hint; fall back to default double-buffering if this build rejects it.
        ctx, w = build(False)(feats_flat, hproj, wf, v2)
    return ctx, w


def _reference(features, hidden, w_attn, b_attn, v_weight):
    """Pure-JAX reference mirroring the PyTorch forward exactly."""
    B, L, F = features.shape
    H = hidden.shape[1]
    hid = jnp.broadcast_to(hidden[:, None, :], (B, L, H))
    cat = jnp.concatenate([features, hid], axis=2)                   # (B, L, F+H)
    energy = jnp.tanh(jnp.einsum("blk,hk->blh", cat, w_attn) + b_attn)
    attention = jnp.einsum("blh,oh->blo", energy, v_weight)[..., 0]  # (B, L)
    weights = jax.nn.softmax(attention, axis=1)
    context = jnp.einsum("bl,blf->bf", weights, features)
    return context, weights


if __name__ == "__main__":
    # B=16 so the heuristic picks an 8-aligned tile (tb=8) with a 2-step
    # "parallel" grid (v7x megacore); L/F/H small, as the module implies.
    B, L, F, H = 16, 8, 32, 32

    key = jax.random.PRNGKey(0)
    k1, k2, k3, k4, k5 = jax.random.split(key, 5)

    features = jax.random.normal(k1, (B, L, F), dtype=jnp.float32)
    hidden = jax.random.normal(k2, (B, H), dtype=jnp.float32)

    # Deterministic parameter init (uniform, roughly matching nn.Linear scale).
    bound_attn = 1.0 / jnp.sqrt(F + H)
    w_attn = jax.random.uniform(k3, (H, F + H), jnp.float32, -bound_attn, bound_attn)
    b_attn = jax.random.uniform(k4, (H,), jnp.float32, -bound_attn, bound_attn)
    bound_v = 1.0 / jnp.sqrt(H)
    v_weight = jax.random.uniform(k5, (1, H), jnp.float32, -bound_v, bound_v)

    ctx_ref, w_ref = _reference(features, hidden, w_attn, b_attn, v_weight)

    # Default (bf16 feature stream) path — the production configuration.
    ctx_bf, w_bf = additive_attention(features, hidden, w_attn, b_attn, v_weight)
    jax.block_until_ready((ctx_bf, w_bf))
    assert ctx_bf.shape == (B, F) and w_bf.shape == (B, L)
    assert jnp.allclose(ctx_bf, ctx_ref, atol=2.5e-2, rtol=2.5e-2), "bf16 context mismatch"
    assert jnp.allclose(w_bf, w_ref, atol=2.5e-2, rtol=2.5e-2), "bf16 weights mismatch"

    # Full-f32 path — tight numerical check (only the approximate EUP
    # reciprocal in the softmax denominator differs from the reference).
    ctx_f32, w_f32 = additive_attention(features, hidden, w_attn, b_attn,
                                        v_weight, compute_dtype=jnp.float32)
    jax.block_until_ready((ctx_f32, w_f32))
    assert jnp.allclose(ctx_f32, ctx_ref, atol=5e-3, rtol=5e-3), "f32 context mismatch"
    assert jnp.allclose(w_f32, w_ref, atol=5e-3, rtol=5e-3), "f32 weights mismatch"

    print("KERNEL_OK")
</pallas_src>

<mosaic_0001>
module attributes {stable_mosaic.version = 11 : i64} {
  func.func @_additive_attention_kernel(%arg0: i32, %arg1: memref<64x32xbf16, #tpu.memory_space<vmem>>, %arg2: memref<8x32xf32, #tpu.memory_space<vmem>>, %arg3: memref<32x32xbf16, #tpu.memory_space<vmem>>, %arg4: memref<1x32xf32, #tpu.memory_space<vmem>>, %arg5: memref<8x32xf32, #tpu.memory_space<vmem>>, %arg6: memref<8x8xf32, #tpu.memory_space<vmem>>) attributes {dimension_semantics = [#tpu.dimension_semantics<parallel>], iteration_bounds = array<i64: 2>, scalar_prefetch = 0 : i64, scratch_operands = 0 : i64, tpu.core_type = #tpu.core_type<tc>, window_params = [{transform_indices = @transform_0, window_bounds = array<i64: 64, 32>}, {transform_indices = @transform_1, window_bounds = array<i64: 8, 32>}, {pipeline_mode = #tpu.pipeline_mode<synchronous>, transform_indices = @transform_2, window_bounds = array<i64: 32, 32>}, {pipeline_mode = #tpu.pipeline_mode<synchronous>, transform_indices = @transform_3, window_bounds = array<i64: 1, 32>}, {transform_indices = @transform_4, window_bounds = array<i64: 8, 32>}, {transform_indices = @transform_5, window_bounds = array<i64: 8, 8>}]} {
    %c0 = arith.constant 0 : index
    %c0_0 = arith.constant 0 : index
    %0 = vector.load %arg1[%c0, %c0_0] : memref<64x32xbf16, #tpu.memory_space<vmem>>, vector<64x32xbf16>
    %c0_1 = arith.constant 0 : index
    %c0_2 = arith.constant 0 : index
    %1 = vector.load %arg3[%c0_1, %c0_2] : memref<32x32xbf16, #tpu.memory_space<vmem>>, vector<32x32xbf16>
    %cst = arith.constant dense<0.000000e+00> : vector<64x32xf32>
    %2 = tpu.matmul %0, %1, %cst {dimension_numbers = #tpu.dot_dimension_numbers<[1], [0], [0], [1], [0, 0, 1, 1], [], []>} : vector<64x32xbf16>, vector<32x32xbf16>, vector<64x32xf32> -> vector<64x32xf32>
    %3 = vector.shape_cast %2 : vector<64x32xf32> to vector<8x8x32xf32>
    %c0_3 = arith.constant 0 : index
    %c0_4 = arith.constant 0 : index
    %4 = vector.load %arg2[%c0_3, %c0_4] : memref<8x32xf32, #tpu.memory_space<vmem>>, vector<8x32xf32>
    %5 = vector.shape_cast %4 : vector<8x32xf32> to vector<8x1x32xf32>
    %6 = vector.broadcast %5 : vector<8x1x32xf32> to vector<8x8x32xf32>
    %7 = arith.addf %3, %6 : vector<8x8x32xf32>
    %8 = math.tanh %7 : vector<8x8x32xf32>
    %c0_5 = arith.constant 0 : index
    %c0_6 = arith.constant 0 : index
    %9 = vector.load %arg4[%c0_5, %c0_6] : memref<1x32xf32, #tpu.memory_space<vmem>>, vector<1x32xf32>
    %10 = vector.shape_cast %9 : vector<1x32xf32> to vector<1x1x32xf32>
    %11 = vector.broadcast %10 : vector<1x1x32xf32> to vector<8x8x32xf32>
    %12 = arith.mulf %8, %11 : vector<8x8x32xf32>
    %cst_7 = arith.constant dense<0.000000e+00> : vector<8x8xf32>
    %13 = vector.multi_reduction <add>, %12, %cst_7 [2] : vector<8x8x32xf32> to vector<8x8xf32>
    %cst_8 = arith.constant dense<0xFF800000> : vector<8xf32>
    %14 = vector.multi_reduction <maximumf>, %13, %cst_8 [1] : vector<8x8xf32> to vector<8xf32>
    %15 = vector.shape_cast %14 : vector<8xf32> to vector<8x1xf32>
    %16 = vector.broadcast %15 : vector<8x1xf32> to vector<8x8xf32>
    %17 = arith.subf %13, %16 : vector<8x8xf32>
    %18 = math.exp %17 : vector<8x8xf32>
    %cst_9 = arith.constant dense<0.000000e+00> : vector<8xf32>
    %19 = vector.multi_reduction <add>, %18, %cst_9 [1] : vector<8x8xf32> to vector<8xf32>
    %20 = vector.shape_cast %19 : vector<8xf32> to vector<8x1xf32>
    %21 = tpu.reciprocal %20 {approx = true} : vector<8x1xf32> -> vector<8x1xf32>
    %22 = vector.broadcast %21 : vector<8x1xf32> to vector<8x8xf32>
    %23 = arith.mulf %18, %22 : vector<8x8xf32>
    %24 = vector.shape_cast %0 : vector<64x32xbf16> to vector<8x8x32xbf16>
    %25 = arith.extf %24 : vector<8x8x32xbf16> to vector<8x8x32xf32>
    %26 = vector.shape_cast %23 : vector<8x8xf32> to vector<8x8x1xf32>
    %27 = vector.broadcast %26 : vector<8x8x1xf32> to vector<8x8x32xf32>
    %28 = arith.mulf %25, %27 : vector<8x8x32xf32>
    %cst_10 = arith.constant dense<0.000000e+00> : vector<8x32xf32>
    %29 = vector.multi_reduction <add>, %28, %cst_10 [1] : vector<8x8x32xf32> to vector<8x32xf32>
    %c0_11 = arith.constant 0 : index
    %c0_12 = arith.constant 0 : index
    %30 = vector.load %arg5[%c0_11, %c0_12] : memref<8x32xf32, #tpu.memory_space<vmem>>, vector<8x32xf32>
    tpu.vector_store %arg5[%c0_11, %c0_12], %29 {strides = array<i32>} : memref<8x32xf32, #tpu.memory_space<vmem>>, vector<8x32xf32>,
    %c0_13 = arith.constant 0 : index
    %c0_14 = arith.constant 0 : index
    %31 = vector.load %arg6[%c0_13, %c0_14] : memref<8x8xf32, #tpu.memory_space<vmem>>, vector<8x8xf32>
    tpu.vector_store %arg6[%c0_13, %c0_14], %23 {strides = array<i32>} : memref<8x8xf32, #tpu.memory_space<vmem>>, vector<8x8xf32>,
    return
  }
  func.func @transform_0(%arg0: i32) -> (i32, i32) {
    %c0_i32 = arith.constant 0 : i32
    %c0_i32_0 = arith.constant 0 : i32
    return %arg0, %c0_i32 : i32, i32
  }
  func.func @transform_1(%arg0: i32) -> (i32, i32) {
    %c0_i32 = arith.constant 0 : i32
    %c0_i32_0 = arith.constant 0 : i32
    return %arg0, %c0_i32 : i32, i32
  }
  func.func @transform_2(%arg0: i32) -> (i32, i32) {
    %c0_i32 = arith.constant 0 : i32
    %c0_i32_0 = arith.constant 0 : i32
    %c0_i32_1 = arith.constant 0 : i32
    return %c0_i32, %c0_i32_0 : i32, i32
  }
  func.func @transform_3(%arg0: i32) -> (i32, i32) {
    %c0_i32 = arith.constant 0 : i32
    %c0_i32_0 = arith.constant 0 : i32
    %c0_i32_1 = arith.constant 0 : i32
    return %c0_i32, %c0_i32_0 : i32, i32
  }
  func.func @transform_4(%arg0: i32) -> (i32, i32) {
    %c0_i32 = arith.constant 0 : i32
    %c0_i32_0 = arith.constant 0 : i32
    return %arg0, %c0_i32 : i32, i32
  }
  func.func @transform_5(%arg0: i32) -> (i32, i32) {
    %c0_i32 = arith.constant 0 : i32
    %c0_i32_0 = arith.constant 0 : i32
    return %arg0, %c0_i32 : i32, i32
  }
}

module attributes {stable_mosaic.version = 11 : i64} {
  func.func @_additive_attention_kernel(%arg0: i32, %arg1: memref<64x32xbf16, #tpu.memory_space<vmem>>, %arg2: memref<8x32xf32, #tpu.memory_space<vmem>>, %arg3: memref<32x32xbf16, #tpu.memory_space<vmem>>, %arg4: memref<1x32xf32, #tpu.memory_space<vmem>>, %arg5: memref<8x32xf32, #tpu.memory_space<vmem>>, %arg6: memref<8x8xf32, #tpu.memory_space<vmem>>) attributes {dimension_semantics = [#tpu.dimension_semantics<parallel>], iteration_bounds = array<i64: 2>, scalar_prefetch = 0 : i64, scratch_operands = 0 : i64, tpu.core_type = #tpu.core_type<tc>, window_params = [{transform_indices = @transform_0, window_bounds = array<i64: 64, 32>}, {transform_indices = @transform_1, window_bounds = array<i64: 8, 32>}, {pipeline_mode = #tpu.pipeline_mode<synchronous>, transform_indices = @transform_2, window_bounds = array<i64: 32, 32>}, {pipeline_mode = #tpu.pipeline_mode<synchronous>, transform_indices = @transform_3, window_bounds = array<i64: 1, 32>}, {transform_indices = @transform_4, window_bounds = array<i64: 8, 32>}, {transform_indices = @transform_5, window_bounds = array<i64: 8, 8>}]} {
    %c0 = arith.constant 0 : index
    %c0_0 = arith.constant 0 : index
    %0 = vector.load %arg1[%c0, %c0_0] : memref<64x32xbf16, #tpu.memory_space<vmem>>, vector<64x32xbf16>
    %c0_1 = arith.constant 0 : index
    %c0_2 = arith.constant 0 : index
    %1 = vector.load %arg3[%c0_1, %c0_2] : memref<32x32xbf16, #tpu.memory_space<vmem>>, vector<32x32xbf16>
    %cst = arith.constant dense<0.000000e+00> : vector<64x32xf32>
    %2 = tpu.matmul %0, %1, %cst {dimension_numbers = #tpu.dot_dimension_numbers<[1], [0], [0], [1], [0, 0, 1, 1], [], []>} : vector<64x32xbf16>, vector<32x32xbf16>, vector<64x32xf32> -> vector<64x32xf32>
    %3 = vector.shape_cast %2 : vector<64x32xf32> to vector<8x8x32xf32>
    %c0_3 = arith.constant 0 : index
    %c0_4 = arith.constant 0 : index
    %4 = vector.load %arg2[%c0_3, %c0_4] : memref<8x32xf32, #tpu.memory_space<vmem>>, vector<8x32xf32>
    %5 = vector.shape_cast %4 : vector<8x32xf32> to vector<8x1x32xf32>
    %6 = vector.broadcast %5 : vector<8x1x32xf32> to vector<8x8x32xf32>
    %7 = arith.addf %3, %6 : vector<8x8x32xf32>
    %8 = math.tanh %7 : vector<8x8x32xf32>
    %c0_5 = arith.constant 0 : index
    %c0_6 = arith.constant 0 : index
    %9 = vector.load %arg4[%c0_5, %c0_6] : memref<1x32xf32, #tpu.memory_space<vmem>>, vector<1x32xf32>
    %10 = vector.shape_cast %9 : vector<1x32xf32> to vector<1x1x32xf32>
    %11 = vector.broadcast %10 : vector<1x1x32xf32> to vector<8x8x32xf32>
    %12 = arith.mulf %8, %11 : vector<8x8x32xf32>
    %cst_7 = arith.constant dense<0.000000e+00> : vector<8x8xf32>
    %13 = vector.multi_reduction <add>, %12, %cst_7 [2] : vector<8x8x32xf32> to vector<8x8xf32>
    %cst_8 = arith.constant dense<0xFF800000> : vector<8xf32>
    %14 = vector.multi_reduction <maximumf>, %13, %cst_8 [1] : vector<8x8xf32> to vector<8xf32>
    %15 = vector.shape_cast %14 : vector<8xf32> to vector<8x1xf32>
    %16 = vector.broadcast %15 : vector<8x1xf32> to vector<8x8xf32>
    %17 = arith.subf %13, %16 : vector<8x8xf32>
    %18 = math.exp %17 : vector<8x8xf32>
    %cst_9 = arith.constant dense<0.000000e+00> : vector<8xf32>
    %19 = vector.multi_reduction <add>, %18, %cst_9 [1] : vector<8x8xf32> to vector<8xf32>
    %20 = vector.shape_cast %19 : vector<8xf32> to vector<8x1xf32>
    %21 = tpu.reciprocal %20 {approx = true} : vector<8x1xf32> -> vector<8x1xf32>
    %22 = vector.broadcast %21 : vector<8x1xf32> to vector<8x8xf32>
    %23 = arith.mulf %18, %22 : vector<8x8xf32>
    %24 = vector.shape_cast %0 : vector<64x32xbf16> to vector<8x8x32xbf16>
    %25 = arith.extf %24 : vector<8x8x32xbf16> to vector<8x8x32xf32>
    %26 = vector.shape_cast %23 : vector<8x8xf32> to vector<8x8x1xf32>
    %27 = vector.broadcast %26 : vector<8x8x1xf32> to vector<8x8x32xf32>
    %28 = arith.mulf %25, %27 : vector<8x8x32xf32>
    %cst_10 = arith.constant dense<0.000000e+00> : vector<8x32xf32>
    %29 = vector.multi_reduction <add>, %28, %cst_10 [1] : vector<8x8x32xf32> to vector<8x32xf32>
    %c0_11 = arith.constant 0 : index
    %c0_12 = arith.constant 0 : index
    %30 = vector.load %arg5[%c0_11, %c0_12] : memref<8x32xf32, #tpu.memory_space<vmem>>, vector<8x32xf32>
    tpu.vector_store %arg5[%c0_11, %c0_12], %29 {strides = array<i32>} : memref<8x32xf32, #tpu.memory_space<vmem>>, vector<8x32xf32>,
    %c0_13 = arith.constant 0 : index
    %c0_14 = arith.constant 0 : index
    %31 = vector.load %arg6[%c0_13, %c0_14] : memref<8x8xf32, #tpu.memory_space<vmem>>, vector<8x8xf32>
    tpu.vector_store %arg6[%c0_13, %c0_14], %23 {strides = array<i32>} : memref<8x8xf32, #tpu.memory_space<vmem>>, vector<8x8xf32>,
    return
  }
  func.func @transform_0(%arg0: i32) -> (i32, i32) {
    %c0_i32 = arith.constant 0 : i32
    %c0_i32_0 = arith.constant 0 : i32
    return %arg0, %c0_i32 : i32, i32
  }
  func.func @transform_1(%arg0: i32) -> (i32, i32) {
    %c0_i32 = arith.constant 0 : i32
    %c0_i32_0 = arith.constant 0 : i32
    return %arg0, %c0_i32 : i32, i32
  }
  func.func @transform_2(%arg0: i32) -> (i32, i32) {
    %c0_i32 = arith.constant 0 : i32
    %c0_i32_0 = arith.constant 0 : i32
    %c0_i32_1 = arith.constant 0 : i32
    return %c0_i32, %c0_i32_0 : i32, i32
  }
  func.func @transform_3(%arg0: i32) -> (i32, i32) {
    %c0_i32 = arith.constant 0 : i32
    %c0_i32_0 = arith.constant 0 : i32
    %c0_i32_1 = arith.constant 0 : i32
    return %c0_i32, %c0_i32_0 : i32, i32
  }
  func.func @transform_4(%arg0: i32) -> (i32, i32) {
    %c0_i32 = arith.constant 0 : i32
    %c0_i32_0 = arith.constant 0 : i32
    return %arg0, %c0_i32 : i32, i32
  }
  func.func @transform_5(%arg0: i32) -> (i32, i32) {
    %c0_i32 = arith.constant 0 : i32
    %c0_i32_0 = arith.constant 0 : i32
    return %arg0, %c0_i32 : i32, i32
  }
}

</mosaic_0001>

<bundles_post_ra>
// kernel: tpu_custom_call.1
= control target key start
LH: loop header
LB: loop body
LE: loop exit
PB: predicated region body
PF: predicated region fallthrough
CT: control target
= control target key end

     0   :  { %11 = vsyncpa [#allocation3], 0  ;;  %s1569_s0 = inlined_call_operand.vmem [shape: bf16[128,32], index: 0, kind: input, shape index: {}]   ;;  %s1570_s1 = inlined_call_operand.vmem [shape: f32[16,32], index: 1, kind: input, shape index: {}]   ;;  %s1571_s2 = inlined_call_operand.vmem [shape: bf16[32,32], index: 2, kind: input, shape index: {}]   ;;  %s1572_s3 = inlined_call_operand.vmem [shape: f32[1,32], index: 3, kind: input, shape index: {}]   ;;  %s1573_s4 = inlined_call_operand.hbm [shape: f32[16,32], index: 4, kind: output, shape index: {0}]   ;;  %s1574_s5 = inlined_call_operand.vmem [shape: f32[16,8], index: 5, kind: output, shape index: {1}]  }
   0x1   :  { %13 = vsyncpa [#allocation3 + $0x1], 0  ;;  %s1290_s18 = smov 0   ;;  %s1292_s19 = smov 0  }
   0x2   :  { %s1294_s20 = smov 0   ;;  %s1296_s21 = smov 0  }
   0x3 LB: > { %s1311_s22 = sadd.s32 4294967295, %s1255_s21   ;;  %s1059_s23 = sadd.s32 4294967294, %s1255_s21   ;;  %s1255_s21 = sphi %s1296_s21, %s1580_s21   ;;  %s1251_s20 = sphi %s1294_s20, %s1579_s20   ;;  %s1247_s19 = sphi %s1292_s19, %s1578_s19   ;;  %s1243_s18 = sphi %s1290_s18, %s1577_s18  }
   0x4   : > { %s1315_s24 = sadd.s32 1, %s1255_s21   ;;  %s120_s25 = sadd.s32 1, %s1251_s20 }
   0x5   : > { %s117_s26 = ssub.s32 %s1255_s21, %s1315_s24  ;;  %p130_p0 = scmp.ne.s32.totalorder %s1251_s20, %s1247_s19 }
   0x6   : > { %p118_p1 = scmp.eq.s32.totalorder %s117_s26, 0  ;;  %p131_p2 = scmp.eq.s32.totalorder %s1311_s22, 1 }
   0x7   : > { %p136_p3 = scmp.ne.s32.totalorder %s1247_s19, %s1243_s18  ;;  %p137_p4 = scmp.eq.s32.totalorder %s1059_s23, 1 }
   0x8   : > { %s1326_s27 = scalar_select %p118_p1, %s1251_s20, %s120_s25  }
   0x9   : > { %p1328_p5 = por %p131_p2, %p130_p0  ;;  %p1332_p6 = por %p137_p4, %p136_p3 }
   0xa   : > { %p1062_p7 = scmp.ge.s32.totalorder %s1255_s21, 1  ;;  %p203_p8 = scmp.lt.s32.totalorder %s1255_s21, 3 }
   0xc   : > { %p204_p9 = pnand %p1062_p7, %p203_p8 }
   0xd   : > { %v1148_v0 = vld [vmem:[%s1571_s2] sm:$0xff] (!%p204_p9)   ;;  %s1064_s7 = sshll.u32 (!%p204_p9), %s1311_s22, 3  ;;  %v1149_v1 = vld [vmem:[%s1571_s2 + $0x8] sm:$0xff] (!%p204_p9)   ;;  %vm298_vm0 = vcmask (!%p204_p9), 261120   ;;  %p245_p11 = scmp.lt.s32.totalorder (!%p204_p9), %s1311_s22, 1  ;;  %v382_v8 = vlaneseq (!%p204_p9)  ;;  %vm564_vm1 = vcmask (!%p204_p9), 1041409  }
   0xe   : > { %207 = sbr.rel (%p204_p9) target bundleno = 1072 (0x430), region = 36  ;;  %p240_p10 = scmp.lt.s32.totalorder (!%p204_p9), %s1064_s7, 15  ;;  %1089 = vmatprep.subr.bf16.mxu0 (!%p204_p9), %v1148_v0  ;;  %1101 = vmatprep.subr.bf16.mxu1 (!%p204_p9), %v1148_v0  ;;  %v1257_v6 = vmov (!%p204_p9), 1966171168   ;;  %v1078_v51 = vld [vmem:[%s1572_s3] ss:$0 sm:$0xff] (!%p204_p9) }
   0xf   : > { %1090 = vmatpush3.bf16.msra.mxu0 (!%p204_p9), %v1148_v0  ;;  %1103 = vmatpush3.bf16.msra.mxu1 (!%p204_p9), %v1148_v0  ;;  %v380_v7 = vunpack.c.l.s4 (!%p204_p9), %v1257_v6  ;;  %v1370_v10 = vshrl.u32 (!%p204_p9), %v382_v8, 7  ;;  %vm566_vm2 = vcmask (!%p204_p9), 1042434   ;;  %vm568_vm3 = vcmask (!%p204_p9), 1043459   ;;  %s230_s8 = sand.u32 (!%p204_p9), 1, %s1247_s19   ;;  %s1259_s17 = smov (!%p204_p9), [#allocation2]  }
  0x10   : > { %1091 = vmatprep.subr.bf16.mxu0 (!%p204_p9), %v1149_v1  ;;  %1102 = vmatprep.subr.bf16.mxu1 (!%p204_p9), %v1149_v1  ;;  %vm570_vm4 = vcmask (!%p204_p9), 1044484   ;;  %vm572_vm5 = vcmask (!%p204_p9), 1045509   ;;  %vm574_vm6 = vcmask (!%p204_p9), 1046534   ;;  %vm576_vm7 = vcmask (!%p204_p9), 1047559   ;;  %s1063_s9 = sshll.u32 (!%p204_p9), %s230_s8, 3 }
  0x11   : > { %v381_v9 = vunpack.c.0.s8 (!%p204_p9), %v380_v7  ;;  %v1379_v21 = vsub.s32 (!%p204_p9), 0, %v1370_v10  ;;  %vm579_vm8 = vcmask (!%p204_p9), 64512   ;;  %s232_s11 = scalar_lea.vmem (!%p204_p9), [#allocation2], %s1063_s9 }
  0x12   : > { %s961_s12 = sshll.u32 (!%p204_p9), %s232_s11, 4  ;;  %s1527_s12 = int_to_ptr.vmem [resolvable:$true] %s961_s12 }
  0x13   : > { %1092 = vmatpush3.bf16.msra.mxu0 (!%p204_p9), %v1149_v1  ;;  %1104 = vmatpush3.bf16.msra.mxu1 (!%p204_p9), %v1149_v1  ;;  %v384_v11 = vsub.s32 (!%p204_p9), %v381_v9, %v1370_v10  ;;  %s1193_s16 = scalar_lea.vmem (!%p204_p9), %s1527_s12, 128 }
  0x14   : > { %p1194_p12 = scmp.ne.s32.totalorder (!%p204_p9), %s1527_s12, %s1193_s16 }
  0x15   : > { %s1582_s7 = smov (!%p240_p10, %s1064_s7), 15 }
  0x16   : > { %s1065_s10 = sshll.u32 %s1582_s7, 2  ;;  %p1195_p13 = pnand %p1194_p12, %p1328_p5 }
  0x17   : > { %s243_s13 = scalar_lea.vmem %s1569_s0, %s1065_s10  ;;  %s1080_s10 = sshll.u32 %s1311_s22, 7 }
  0x18   : > { %v1348_v2 = vld [vmem:[%s243_s13] sm:$0xff]   ;;  %v1350_v3 = vld [vmem:[%s243_s13 + $0x8] sm:$0xff]   ;;  %v1352_v4 = vld [vmem:[%s243_s13 + $0x10] sm:$0xff]   ;;  %s1366_s14 = scalar_select %p245_p11, %s1311_s22, 1 }
  0x19   : > { %v1354_v5 = vld [vmem:[%s243_s13 + $0x18] sm:$0xff]   ;;  %1093 = vmatprep.mubr.msk.bf16.mxu0 %vm298_vm0, %v1348_v2  ;;  %1097 = vmatprep.mubr.msk.bf16.mxu1 %vm298_vm0, %v1352_v4  ;;  %s944_s22 = scalar_lea.sflag [#allocation3], %s230_s8  ;;  %p1196_p0 = pneg %p1195_p13 }
  0x1a   : > { %1094 = vmatmul.mubr.msk.bf16.vlgmr.msra.gmra.mrb[0].mxu0 %vm298_vm0, %v1350_v3  ;;  %1098 = vmatmul.mubr.msk.bf16.vlgmr.msra.gmra.mrb[0].mxu1 %vm298_vm0, %v1354_v5  ;;  %s1066_s15 = sshll.u32 %s1366_s14, 3 }
  0x1b   : > { %s248_s23 = scalar_lea.vmem %s1570_s1, %s1066_s15  ;;  %s252_s7 = scalar_lea.vmem %s1574_s5, %s1066_s15 }
  0x1c   : > { %v376_v12 = vld [vmem:[%s248_s23] sm:$0xff]  ;;  %s1525_s15 = scalar_lea.hbm %s1573_s4, %s1080_s10  ;;  %s1197_s23 = sshll.u32 %s1259_s17, 4  ;;  %s1198_s23 = int_to_ptr.vmem [resolvable:$false] %s1197_s23 }
  0x1d   : > { %v385_v13 = vrot.slane %v376_v12, %v384_v11  ;;  %v378_v14 = vcombine.high %v376_v12, %v376_v12  ;;  %s1199_s25 = scalar_lea.vmem %s1198_s23, 256  ;;  %p1200_p1 = scmp.lt.s32.totalorder %s1527_s12, %s1198_s23 }
  0x1e   : > { %p1201_p2 = scmp.lt.s32.totalorder %s1199_s25, %s1193_s16 }
  0x1f   : > { %v393_v15 = vcombine.high %v385_v13, %v385_v13  ;;  %v392_v16 = vrot.slane %v378_v14, %v384_v11  ;;  %v401_v17 = vrot.slane %v385_v13, %v384_v11 }
  0x20   : > { %p1202_p3 = por %p1201_p2, %p1200_p1 }
  0x21   : > { %v415_v18 = vrot.slane %v393_v15, %v384_v11  ;;  %v394_v19 = vcombine.high %v392_v16, %v392_v16  ;;  %v423_v20 = vcombine.high %v401_v17, %v401_v17  ;;  %v408_v24 = vrot.slane %v392_v16, %v384_v11 }
  0x22   : > { %v430_v26 = vrot.slane %v401_v17, %v1379_v21  ;;  %p1203_p4 = pnand %p1202_p3, %p1196_p0 }
  0x23   : > { %v425_v22 = vcombine.high %v415_v18, %v415_v18  ;;  %v422_v23 = vrot.slane %v394_v19, %v384_v11  ;;  %v438_v25 = vrot.slane %v423_v20, %v1379_v21  ;;  %v434_v30 = vrot.slane %v415_v18, %v1379_v21 }
  0x24   : > { %v424_v31 = vcombine.high %v408_v24, %v408_v24  ;;  %v446_v32 = vrot.slane %v408_v24, %v1379_v21  ;;  %v531_v18 = vand.u32 127, %v382_v8 }
  0x25   : > { %v442_v27 = vrot.slane %v425_v22, %v1379_v21  ;;  %v426_v28 = vcombine.high %v422_v23, %v422_v23  ;;  %v450_v39 = vrot.slane %v422_v23, %v1379_v21 }
  0x26   : > { %v454_v45 = vrot.slane %v424_v31, %v1379_v21  ;;  %v1402_v22 = vsub.s32 %v531_v18, %v1370_v10 }
  0x27   : > { %v458_v43 = vrot.slane %v426_v28, %v1379_v21 }
  0xed   : > { %v1095_v29 = vpop.f32.mrb[0].mxu0  ;;  %v1099_v35 = vpop.f32.mrb[0].mxu1 }
  0xee   : > { %v469_v33 = vadd.f32 %v1095_v29, %v438_v25  ;;  %v345_v34 = vpop.f32.mrb[1].mxu0  ;;  %v361_v38 = vpop.f32.mrb[1].mxu1  ;;  %v473_v50 = vadd.f32 %v1099_v35, %v454_v45  ;;  %v590_v45 = vsub.s32 1, %v1370_v10 }
  0xef   : > { %v467_v36 = vadd.f32 %v430_v26, %v345_v34  ;;  %v1096_v37 = vpop.f32.mrb[2].mxu0  ;;  %v1100_v42 = vpop.f32.mrb[2].mxu1  ;;  %v471_v46 = vadd.f32 %v446_v32, %v361_v38 }
  0xf0   : > { %1159 = vtanh.f32 %v469_v33  ;;  %v470_v40 = vadd.f32 %v1096_v37, %v442_v27  ;;  %v348_v41 = vpop.f32.mrb[3].mxu0  ;;  %v364_v47 = vpop.f32.mrb[3].mxu1  ;;  %v474_v49 = vadd.f32 %v1100_v42, %v458_v43 }
  0xf1   : > { %1161 = vtanh.f32 %v467_v36  ;;  %v468_v44 = vadd.f32 %v434_v30, %v348_v41  ;;  %v472_v48 = vadd.f32 %v450_v39, %v364_v47  ;;  %v598_v47 = vsub.s32 3, %v1370_v10 }
  0xf2   : > { %1163 = vtanh.f32 %v470_v40 }
  0xf3   : > { %1165 = vtanh.f32 %v468_v44  ;;  %v1258_v44 = vmov 0  }
  0xf4   : > { %1167 = vtanh.f32 %v471_v46  ;;  %1147 = vset.pattern.permute.xlu0 %v1258_v44  ;;  %1146 = vset.pattern.permute.xlu1 %v1258_v44  ;;  %v594_v46 = vsub.s32 2, %v1370_v10 }
  0xf5   : > { %1169 = vtanh.f32 %v472_v48 }
  0xf6   : > { %1171 = vtanh.f32 %v474_v49 }
  0xf7   : > { %1173 = vtanh.f32 %v473_v50 }
  0xfa   : > { %v1160_v52 = vpop.eup %1159 }
  0xfb   : > { %v1162_v53 = vpop.eup %1161  ;;  %v492_v54 = vmul.f32 %v1160_v52, %v1078_v51  ;;  %v602_v52 = vsub.s32 4, %v1370_v10 }
  0xfc   : > { %v1164_v55 = vpop.eup %1163  ;;  %v490_v56 = vmul.f32 %v1162_v53, %v1078_v51 }
  0xfd   : > { %v1166_v57 = vpop.eup %1165  ;;  %v504_v58 = vsel %vm298_vm0, %v492_v54, 0.0  ;;  %v493_v59 = vmul.f32 %v1164_v55, %v1078_v51 }
  0xfe   : > { %505 = vadd.xlane.f32.xlu1 %v504_v58  ;;  %v498_v60 = vsel %vm298_vm0, %v490_v56, 0.0  ;;  %v491_v61 = vmul.f32 %v1166_v57, %v1078_v51  ;;  %v1168_v62 = vpop.eup %1167 }
  0xff   : > { %499 = vadd.xlane.f32.xlu0 %v498_v60  ;;  %v1170_v63 = vpop.eup %1169  ;;  %v507_v0 = vsel %vm298_vm0, %v493_v59, 0.0  ;;  %v494_v9 = vmul.f32 %v1168_v62, %v1078_v51  ;;  %v606_v59 = vsub.s32 5, %v1370_v10 }
 0x100   : > { %v1172_v1 = vpop.eup %1171  ;;  %v501_v6 = vsel %vm298_vm0, %v491_v61, 0.0  ;;  %v495_v7 = vmul.f32 %v1170_v63, %v1078_v51  ;;  %v610_v63 = vsub.s32 6, %v1370_v10 }
 0x101   : > { %v1174_v11 = vpop.eup %1173  ;;  %v497_v13 = vmul.f32 %v1172_v1, %v1078_v51  ;;  %v510_v14 = vsel %vm298_vm0, %v494_v9, 0.0 }
 0x102   : > { %508 = vadd.xlane.f32.xlu1 %v507_v0  ;;  %v513_v12 = vsel %vm298_vm0, %v495_v7, 0.0  ;;  %v496_v15 = vmul.f32 %v1174_v11, %v1078_v51  ;;  %v614_v7 = vsub.s32 7, %v1370_v10 }
 0x103   : > { %502 = vadd.xlane.f32.xlu0 %v501_v6  ;;  %v519_v16 = vsel %vm298_vm0, %v497_v13, 0.0 }
 0x104   : > { %v516_v17 = vsel %vm298_vm0, %v496_v15, 0.0 }
 0x106   : > { %514 = vadd.xlane.f32.xlu1 %v513_v12 }
 0x107   : > { %511 = vadd.xlane.f32.xlu0 %v510_v14 }
 0x10a   : > { %520 = vadd.xlane.f32.xlu1 %v519_v16 }
 0x10b   : > { %517 = vadd.xlane.f32.xlu0 %v516_v17 }
 0x18b   : > { %v506_v19 = vpop.xlane.xlu1 %505 }
 0x18c   : > { %v500_v20 = vpop.xlane.xlu0 %499  ;;  %v543_v27 = vrot.slane %v506_v19, %v1402_v22 }
 0x18d   : > { %v535_v25 = vrot.slane %v500_v20, %v1402_v22 }
 0x18f   : > { %v509_v23 = vpop.xlane.xlu1 %508 }
 0x190   : > { %v503_v24 = vpop.xlane.xlu0 %502  ;;  %v547_v28 = vrot.slane %v509_v23, %v1402_v22 }
 0x191   : > { %v539_v26 = vrot.slane %v503_v24, %v1402_v22 }
 0x193   : > { %v565_v8 = vsel %vm564_vm1, %v539_v26, %v535_v25  ;;  %v515_v29 = vpop.xlane.xlu1 %514 }
 0x194   : > { %v567_v30 = vsel %vm566_vm2, %v543_v27, %v565_v8  ;;  %v512_v31 = vpop.xlane.xlu0 %511  ;;  %v555_v36 = vrot.slane %v515_v29, %v1402_v22 }
 0x195   : > { %v569_v32 = vsel %vm568_vm3, %v547_v28, %v567_v30  ;;  %v551_v33 = vrot.slane %v512_v31, %v1402_v22 }
 0x197   : > { %v571_v34 = vsel %vm570_vm4, %v551_v33, %v569_v32  ;;  %v1413_v35 = vpop.xlane.xlu1 %520 }
 0x198   : > { %v518_v37 = vpop.xlane.xlu0 %517  ;;  %v563_v39 = vrot.slane %v1413_v35, %v1402_v22  ;;  %v573_v40 = vsel %vm572_vm5, %v555_v36, %v571_v34 }
 0x199   : > { %v559_v38 = vrot.slane %v518_v37, %v1402_v22 }
 0x19b   : > { %v575_v41 = vsel %vm574_vm6, %v559_v38, %v573_v40 }
 0x19c   : > { %v577_v42 = vsel %vm576_vm7, %v563_v39, %v575_v41 }
 0x19d   : > { %v580_v43 = vsel %vm579_vm8, %v577_v42, -inf }
 0x19e   : > { %581 = vmax.xlane.f32.xlu0 %v580_v43 }
 0x22b   : > { %v582_v48 = vpop.xlane.xlu0 %581 }
 0x22c   : > { %v587_v49 = vrot.slane %v582_v48, %v1379_v21  ;;  %v591_v50 = vrot.slane %v582_v48, %v590_v45  ;;  %v595_v51 = vrot.slane %v582_v48, %v594_v46  ;;  %v599_v53 = vrot.slane %v582_v48, %v598_v47 }
 0x22d   : > { %v603_v60 = vrot.slane %v582_v48, %v602_v52  ;;  %v607_v0 = vrot.slane %v582_v48, %v606_v59  ;;  %v611_v9 = vrot.slane %v582_v48, %v610_v63  ;;  %v615_v15 = vrot.slane %v582_v48, %v614_v7 }
 0x22e   : > { %v624_v54 = vsub.f32 %v500_v20, %v587_v49  ;;  %v625_v55 = vsub.f32 %v503_v24, %v591_v50  ;;  %v626_v56 = vsub.f32 %v506_v19, %v595_v51  ;;  %v627_v61 = vsub.f32 %v509_v23, %v599_v53 }
 0x22f   : > { %v628_v1 = vsub.f32 %v512_v31, %v603_v60  ;;  %v629_v11 = vsub.f32 %v515_v29, %v607_v0  ;;  %v630_v16 = vsub.f32 %v518_v37, %v611_v9  ;;  %v631_v19 = vsub.f32 %v1413_v35, %v615_v15 }
 0x230   : > { %v632_v57 = vmul.f32 1.442695, %v624_v54  ;;  %v634_v58 = vmul.f32 1.442695, %v625_v55  ;;  %v636_v62 = vmul.f32 1.442695, %v626_v56 }
 0x231   : > { %v638_v6 = vmul.f32 1.442695, %v627_v61  ;;  %v640_v12 = vmul.f32 1.442695, %v628_v1  ;;  %v642_v17 = vmul.f32 1.442695, %v629_v11 }
 0x232   : > { %1175 = vpow2.f32 %v632_v57  ;;  %v644_v20 = vmul.f32 1.442695, %v630_v16  ;;  %v646_v24 = vmul.f32 1.442695, %v631_v19  ;;  %v774_v16 = vunpack.c.h.bf16 %v1348_v2 }
 0x233   : > { %1177 = vpow2.f32 %v634_v58 }
 0x234   : > { %1179 = vpow2.f32 %v636_v62 }
 0x235   : > { %1181 = vpow2.f32 %v638_v6 }
 0x236   : > { %1183 = vpow2.f32 %v640_v12 }
 0x237   : > { %1185 = vpow2.f32 %v642_v17 }
 0x238   : > { %1187 = vpow2.f32 %v644_v20 }
 0x239   : > { %1189 = vpow2.f32 %v646_v24 }
 0x23c   : > { %v1176_v13 = vpop.eup %1175 }
 0x23d   : > { %v1178_v14 = vpop.eup %1177  ;;  %657 = vperm.xlu1 %1146, %v1176_v13  }
 0x23e   : > { %660 = vperm.xlu0 %1147, %v1178_v14   ;;  %v1180_v18 = vpop.eup %1179 }
 0x23f   : > { %v1182_v23 = vpop.eup %1181 }
 0x240   : > { %v1184_v25 = vpop.eup %1183 }
 0x241   : > { %663 = vperm.xlu1 %1146, %v1180_v18   ;;  %v1186_v26 = vpop.eup %1185 }
 0x242   : > { %v1188_v27 = vpop.eup %1187 }
 0x243   : > { %v1190_v28 = vpop.eup %1189 }
 0x245   : > { %666 = vperm.xlu1 %1146, %v1182_v23  }
 0x249   : > { %669 = vperm.xlu1 %1146, %v1184_v25  }
 0x24d   : > { %672 = vperm.xlu1 %1146, %v1186_v26  }
 0x251   : > { %675 = vperm.xlu1 %1146, %v1188_v27  }
 0x255   : > { %678 = vperm.xlu1 %1146, %v1190_v28  }
 0x2bc   : > { %v658_v8 = vpop.permute.xlu1 %657 }
 0x2bd   : > { %v661_v32 = vpop.permute.xlu0 %660  ;;  %v683_v35 = vrot.slane %v658_v8, %v1402_v22 }
 0x2be   : > { %v687_v34 = vrot.slane %v661_v32, %v1402_v22 }
 0x2c0   : > { %v664_v29 = vpop.permute.xlu1 %663  ;;  %v712_v40 = vsel %vm564_vm1, %v687_v34, %v683_v35 }
 0x2c1   : > { %v691_v36 = vrot.slane %v664_v29, %v1402_v22 }
 0x2c3   : > { %v713_v42 = vsel %vm566_vm2, %v691_v36, %v712_v40 }
 0x2c4   : > { %v667_v30 = vpop.permute.xlu1 %666 }
 0x2c5   : > { %v695_v37 = vrot.slane %v667_v30, %v1402_v22  ;;  %v777_v30 = vunpack.c.l.bf16 %v1352_v4 }
 0x2c7   : > { %v714_v44 = vsel %vm568_vm3, %v695_v37, %v713_v42 }
 0x2c8   : > { %v670_v31 = vpop.permute.xlu1 %669 }
 0x2c9   : > { %v699_v38 = vrot.slane %v670_v31, %v1402_v22 }
 0x2cb   : > { %v715_v48 = vsel %vm570_vm4, %v699_v38, %v714_v44 }
 0x2cc   : > { %v673_v33 = vpop.permute.xlu1 %672 }
 0x2cd   : > { %v703_v41 = vrot.slane %v673_v33, %v1402_v22 }
 0x2cf   : > { %v716_v50 = vsel %vm572_vm5, %v703_v41, %v715_v48 }
 0x2d0   : > { %v676_v39 = vpop.permute.xlu1 %675 }
 0x2d1   : > { %v707_v43 = vrot.slane %v676_v39, %v1402_v22  ;;  %v778_v39 = vunpack.c.h.bf16 %v1352_v4  ;;  %v779_v4 = vunpack.c.l.bf16 %v1354_v5 }
 0x2d3   : > { %v717_v53 = vsel %vm574_vm6, %v707_v43, %v716_v50 }
 0x2d4   : > { %v679_v49 = vpop.permute.xlu1 %678 }
 0x2d5   : > { %v711_v51 = vrot.slane %v679_v49, %v1402_v22 }
 0x2d7   : > { %v718_v54 = vsel %vm576_vm7, %v711_v51, %v717_v53 }
 0x2d8   : > { %v720_v55 = vsel %vm579_vm8, %v718_v54, 0.0 }
 0x2d9   : > { %721 = vadd.xlane.f32.xlu1 %v720_v55 }
 0x366   : > { %v722_v56 = vpop.xlane.xlu1 %721 }
 0x367   : > { %1191 = vrcp.f32 %v722_v56 }
 0x371   : > { %v1192_v57 = vpop.eup %1191 }
 0x372   : > { %v728_v58 = vrot.slane %v1192_v57, %v1379_v21  ;;  %v732_v61 = vrot.slane %v1192_v57, %v590_v45  ;;  %v736_v0 = vrot.slane %v1192_v57, %v594_v46  ;;  %v740_v6 = vrot.slane %v1192_v57, %v598_v47 }
 0x373   : > { %v744_v11 = vrot.slane %v1192_v57, %v602_v52  ;;  %v748_v45 = vrot.slane %v1192_v57, %v606_v59  ;;  %v752_v46 = vrot.slane %v1192_v57, %v610_v63  ;;  %v756_v47 = vrot.slane %v1192_v57, %v614_v7 }
 0x374   : > { %v765_v60 = vmul.f32 %v1176_v13, %v728_v58  ;;  %v766_v62 = vmul.f32 %v1178_v14, %v732_v61  ;;  %v767_v1 = vmul.f32 %v1180_v18, %v736_v0  ;;  %v768_v9 = vmul.f32 %v1182_v23, %v740_v6 }
 0x375   : > { %v769_v21 = vmul.f32 %v1184_v25, %v744_v11  ;;  %v770_v12 = vmul.f32 %v1186_v26, %v748_v45  ;;  %v771_v13 = vmul.f32 %v1188_v27, %v752_v46  ;;  %v772_v14 = vmul.f32 %v1190_v28, %v756_v47 }
 0x376   : > { %783 = vperm.xlu0 %1147, %v765_v60   ;;  %v773_v52 = vunpack.c.l.bf16 %v1348_v2  ;;  %v775_v63 = vunpack.c.l.bf16 %v1350_v3  ;;  %v776_v26 = vunpack.c.h.bf16 %v1350_v3 }
 0x37a   : > { %788 = vperm.xlu0 %1147, %v766_v62  }
 0x37e   : > { %793 = vperm.xlu0 %1147, %v767_v1  }
 0x382   : > { %798 = vperm.xlu0 %1147, %v768_v9   ;;  %v780_v9 = vunpack.c.h.bf16 %v1354_v5 }
 0x386   : > { %803 = vperm.xlu0 %1147, %v769_v21  }
 0x38a   : > { %808 = vperm.xlu0 %1147, %v770_v12  }
 0x38e   : > { %813 = vperm.xlu0 %1147, %v771_v13  }
 0x392   : > { %818 = vperm.xlu0 %1147, %v772_v14  }
 0x3f5   : > { %v784_v15 = vpop.permute.xlu0 %783 }
 0x3f6   : > { %v821_v17 = vmul.f32 %v784_v15, %v773_v52  ;;  %v905_v49 = vrot.slane %v784_v15, %v1402_v22 }
 0x3f8   : > { %v829_v59 = vsel %vm298_vm0, %v821_v17, 0.0 }
 0x3f9   : > { %v789_v18 = vpop.permute.xlu0 %788  ;;  %v830_v19 = vrot.slane %v829_v59, 4 }
 0x3fa   : > { %v822_v20 = vmul.f32 %v789_v18, %v774_v16  ;;  %v909_v41 = vrot.slane %v789_v18, %v1402_v22 }
 0x3fb   : > { %v831_v24 = vadd.f32 %v830_v19, %v829_v59 }
 0x3fc   : > { %v836_v23 = vsel %vm298_vm0, %v822_v20, 0.0  ;;  %v934_v58 = vsel %vm564_vm1, %v909_v41, %v905_v49 }
 0x3fd   : > { %v837_v10 = vrot.slane %v836_v23, 4  ;;  %v794_v7 = vpop.permute.xlu0 %793  ;;  %v832_v31 = vrot.slane %v831_v24, 2 }
 0x3fe   : > { %v823_v25 = vmul.f32 %v794_v7, %v775_v63  ;;  %v913_v44 = vrot.slane %v794_v7, %v1402_v22 }
 0x3ff   : > { %v838_v27 = vadd.f32 %v837_v10, %v836_v23  ;;  %v833_v3 = vadd.f32 %v832_v31, %v831_v24 }
 0x400   : > { %v843_v28 = vsel %vm298_vm0, %v823_v25, 0.0  ;;  %v935_v0 = vsel %vm566_vm2, %v913_v44, %v934_v58 }
 0x401   : > { %v839_v2 = vrot.slane %v838_v27, 2  ;;  %v844_v8 = vrot.slane %v843_v28, 4  ;;  %v799_v29 = vpop.permute.xlu0 %798  ;;  %v834_v55 = vrot.slane %v833_v3, 1 }
 0x402   : > { %v824_v32 = vmul.f32 %v799_v29, %v776_v26  ;;  %v917_v61 = vrot.slane %v799_v29, %v1402_v22 }
 0x403   : > { %v845_v33 = vadd.f32 %v844_v8, %v843_v28  ;;  %v840_v35 = vadd.f32 %v839_v2, %v838_v27  ;;  %v835_v13 = vadd.f32 %v834_v55, %v833_v3 }
 0x404   : > { %v850_v34 = vsel %vm298_vm0, %v824_v32, 0.0  ;;  %v936_v15 = vsel %vm568_vm3, %v917_v61, %v935_v0 }
 0x405   : > { %v846_v36 = vrot.slane %v845_v33, 2  ;;  %v851_v37 = vrot.slane %v850_v34, 4  ;;  %v804_v38 = vpop.permute.xlu0 %803  ;;  %v841_v50 = vrot.slane %v840_v35, 1 }
 0x406   : > { %v825_v40 = vmul.f32 %v804_v38, %v777_v30  ;;  %v921_v1 = vrot.slane %v804_v38, %v1402_v22 }
 0x407   : > { %v847_v42 = vadd.f32 %v846_v36, %v845_v33  ;;  %v852_v43 = vadd.f32 %v851_v37, %v850_v34  ;;  %v842_v11 = vadd.f32 %v841_v50, %v840_v35 }
 0x408   : > { %v857_v48 = vsel %vm298_vm0, %v825_v40, 0.0  ;;  %v937_v5 = vsel %vm570_vm4, %v921_v1, %v936_v15 }
 0x409   : > { %v853_v51 = vrot.slane %v852_v43, 2  ;;  %v858_v53 = vrot.slane %v857_v48, 4  ;;  %v809_v54 = vpop.permute.xlu0 %808  ;;  %v848_v56 = vrot.slane %v847_v42, 1  ;;  %v893_v20 = vsel %vm564_vm1, %v842_v11, %v835_v13 }
 0x40a   : > { %v826_v57 = vmul.f32 %v809_v54, %v778_v39  ;;  %v925_v14 = vrot.slane %v809_v54, %v1402_v22 }
 0x40b   : > { %v854_v60 = vadd.f32 %v853_v51, %v852_v43  ;;  %v859_v62 = vadd.f32 %v858_v53, %v857_v48  ;;  %v849_v47 = vadd.f32 %v848_v56, %v847_v42 }
 0x40c   : > { %v864_v6 = vsel %vm298_vm0, %v826_v57, 0.0  ;;  %v938_v25 = vsel %vm572_vm5, %v925_v14, %v937_v5 }
 0x40d   : > { %v855_v21 = vrot.slane %v854_v60, 1  ;;  %v860_v45 = vrot.slane %v859_v62, 2  ;;  %v865_v12 = vrot.slane %v864_v6, 4  ;;  %v814_v46 = vpop.permute.xlu0 %813  ;;  %v894_v24 = vsel %vm566_vm2, %v849_v47, %v893_v20 }
 0x40e   : > { %v827_v52 = vmul.f32 %v814_v46, %v779_v4  ;;  %v929_v59 = vrot.slane %v814_v46, %v1402_v22 }
 0x40f   : > { %v861_v16 = vadd.f32 %v860_v45, %v859_v62  ;;  %v866_v17 = vadd.f32 %v865_v12, %v864_v6  ;;  %v856_v18 = vadd.f32 %v855_v21, %v854_v60 }
 0x410   : > { %v871_v19 = vsel %vm298_vm0, %v827_v52, 0.0  ;;  %v939_v29 = vsel %vm574_vm6, %v929_v59, %v938_v25 }
 0x411   : > { %v862_v63 = vrot.slane %v861_v16, 1  ;;  %v867_v23 = vrot.slane %v866_v17, 2  ;;  %v872_v10 = vrot.slane %v871_v19, 4  ;;  %v819_v7 = vpop.permute.xlu0 %818  ;;  %v895_v30 = vsel %vm568_vm3, %v856_v18, %v894_v24 }
 0x412   : > { %v828_v26 = vmul.f32 %v819_v7, %v780_v9  ;;  %v933_v27 = vrot.slane %v819_v7, %v1402_v22 }
 0x413   : > { %v863_v28 = vadd.f32 %v862_v63, %v861_v16  ;;  %v868_v2 = vadd.f32 %v867_v23, %v866_v17  ;;  %v873_v8 = vadd.f32 %v872_v10, %v871_v19 }
 0x414   : > { %v878_v31 = vsel %vm298_vm0, %v828_v26, 0.0  ;;  %v940_v32 = vsel %vm576_vm7, %v933_v27, %v939_v29 }
 0x415   : > { %v869_v33 = vrot.slane %v868_v2, 1  ;;  %v874_v34 = vrot.slane %v873_v8, 2  ;;  %v879_v35 = vrot.slane %v878_v31, 4  ;;  %942 = vst.msk [vmem:[%s252_s7] sm:$0xff] %vm579_vm8, %v940_v32  ;;  %v896_v22 = vsel %vm570_vm4, %v863_v28, %v895_v30 }
 0x417   : > { %v870_v36 = vadd.f32 %v869_v33, %v868_v2  ;;  %v875_v37 = vadd.f32 %v874_v34, %v873_v8  ;;  %v880_v38 = vadd.f32 %v879_v35, %v878_v31 }
 0x419   : > { %v876_v39 = vrot.slane %v875_v37, 1  ;;  %v881_v3 = vrot.slane %v880_v38, 2  ;;  %v897_v40 = vsel %vm572_vm5, %v870_v36, %v896_v22 }
 0x41b   : > { %v882_v41 = vadd.f32 %v881_v3, %v880_v38  ;;  %v877_v42 = vadd.f32 %v876_v39, %v875_v37 }
 0x41d   : > { %v883_v43 = vrot.slane %v882_v41, 1  ;;  %v898_v48 = vsel %vm574_vm6, %v877_v42, %v897_v40 }
 0x41f   : > { %v884_v44 = vadd.f32 %v883_v43, %v882_v41 }
 0x421   : > { %v899_v49 = vsel %vm576_vm7, %v884_v44, %v898_v48 }
 0x422   : > { %901 = vst.msk [vmem:[%s232_s11] sm:$0xff] %vm298_vm0, %v899_v49 }
 0x423   : > { %1206 = shalt.err (!%p1203_p4)
}
 0x424   : > { %s1207_s26 = scalar_lea.hbm %s1525_s15, 128  ;;  %s1211_s7 = scalar_lea.hbm %s1573_s4, 256 }
 0x425   : > { %p1208_p7 = scmp.ne.s32.totalorder %s1525_s15, %s1207_s26  ;;  %p1212_p10 = scmp.lt.u32.totalorder %s1525_s15, %s1573_s4 }
 0x426   : > { %p1213_p11 = scmp.lt.u32.totalorder %s1211_s7, %s1207_s26  ;;  %p1215_p13 = scmp.lt.u32.totalorder %s1207_s26, %s1525_s15 }
 0x427   : > { %p1209_p8 = pnand %p1208_p7, %p1328_p5 }
 0x428   : > { %p1214_p12 = por %p1213_p11, %p1212_p10 }
 0x429   : > { %p1210_p9 = pneg %p1209_p8 }
 0x42a   : > { %p1216_p0 = por %p1215_p13, %p1214_p12 }
 0x42c   : > { %p1217_p1 = pnand %p1216_p0, %p1210_p9 }
 0x42e   : > { %1220 = shalt.err (!%p1217_p1)
}
 0x42f   : > { %1105 = dma.vmem_to_hbm [thread:$0]  (%p1328_p5), %s1527_s12, 128, %s1525_s15, %s944_s22  }
 0x430 PF: > { %p1111_p2 = scmp.ge.s32.totalorder %s1255_s21, 2  ;;  %s976_s10 = sand.u32 1, %s1243_s18  }
 0x431   : > { %s977_s11 = scalar_lea.sflag [#allocation3], %s976_s10 }
 0x432   : > { %p1108_p3 = pnand %p1111_p2, %p1332_p6 }
 0x434   : > { %1238 = dma.done.wait (!%p1108_p3), %s977_s11, 128  }
 0x435   : > { %1240 = vsyncadd (!%p1108_p3), %s977_s11, 4294967168  ;;  %p16_p4 = scmp.ge.s32.totalorder %s1315_s24, 4   ;;  %s1577_s18 = smov %s1247_s19 }
 0x436   : > { %s1578_s19 = smov %s1251_s20  ;;  %s1579_s20 = smov %s1326_s27 }
 0x437   : > { %s1580_s21 = smov %s1315_s24  ;;  %18 = sbr.rel (!%p16_p4) target bundleno = 3 (0x3), region = 86 }
 0x43e   :  { %989 = vsyncpa [#allocation3], 1 }
 0x43f   :  { %991 = vsyncpa [#allocation3 + $0x1], 1 }

// kernel: tpu_custom_call.1
= control target key start
LH: loop header
LB: loop body
LE: loop exit
PB: predicated region body
PF: predicated region fallthrough
CT: control target
= control target key end

     0   :  { %11 = vsyncpa [#allocation3], 0  ;;  %s1569_s0 = inlined_call_operand.vmem [shape: bf16[128,32], index: 0, kind: input, shape index: {}]   ;;  %s1570_s1 = inlined_call_operand.vmem [shape: f32[16,32], index: 1, kind: input, shape index: {}]   ;;  %s1571_s2 = inlined_call_operand.vmem [shape: bf16[32,32], index: 2, kind: input, shape index: {}]   ;;  %s1572_s3 = inlined_call_operand.vmem [shape: f32[1,32], index: 3, kind: input, shape index: {}]   ;;  %s1573_s4 = inlined_call_operand.hbm [shape: f32[16,32], index: 4, kind: output, shape index: {0}]   ;;  %s1574_s5 = inlined_call_operand.vmem [shape: f32[16,8], index: 5, kind: output, shape index: {1}]  }
   0x1   :  { %13 = vsyncpa [#allocation3 + $0x1], 0  ;;  %s1290_s18 = smov 0   ;;  %s1292_s19 = smov 0  }
   0x2   :  { %s1294_s20 = smov 0   ;;  %s1296_s21 = smov 0  }
   0x3 LB: > { %s1311_s22 = sadd.s32 4294967295, %s1255_s21   ;;  %s1059_s23 = sadd.s32 4294967294, %s1255_s21   ;;  %s1255_s21 = sphi %s1296_s21, %s1580_s21   ;;  %s1251_s20 = sphi %s1294_s20, %s1579_s20   ;;  %s1247_s19 = sphi %s1292_s19, %s1578_s19   ;;  %s1243_s18 = sphi %s1290_s18, %s1577_s18  }
   0x4   : > { %s1315_s24 = sadd.s32 1, %s1255_s21   ;;  %s120_s25 = sadd.s32 1, %s1251_s20 }
   0x5   : > { %s117_s26 = ssub.s32 %s1255_s21, %s1315_s24  ;;  %p130_p0 = scmp.ne.s32.totalorder %s1251_s20, %s1247_s19 }
   0x6   : > { %p118_p1 = scmp.eq.s32.totalorder %s117_s26, 0  ;;  %p131_p2 = scmp.eq.s32.totalorder %s1311_s22, 1 }
   0x7   : > { %p136_p3 = scmp.ne.s32.totalorder %s1247_s19, %s1243_s18  ;;  %p137_p4 = scmp.eq.s32.totalorder %s1059_s23, 1 }
   0x8   : > { %s1326_s27 = scalar_select %p118_p1, %s1251_s20, %s120_s25  }
   0x9   : > { %p1328_p5 = por %p131_p2, %p130_p0  ;;  %p1332_p6 = por %p137_p4, %p136_p3 }
   0xa   : > { %p1062_p7 = scmp.ge.s32.totalorder %s1255_s21, 1  ;;  %p203_p8 = scmp.lt.s32.totalorder %s1255_s21, 3 }
   0xc   : > { %p204_p9 = pnand %p1062_p7, %p203_p8 }
   0xd   : > { %v1148_v0 = vld [vmem:[%s1571_s2] sm:$0xff] (!%p204_p9)   ;;  %s1064_s7 = sshll.u32 (!%p204_p9), %s1311_s22, 3  ;;  %v1149_v1 = vld [vmem:[%s1571_s2 + $0x8] sm:$0xff] (!%p204_p9)   ;;  %vm298_vm0 = vcmask (!%p204_p9), 261120   ;;  %p245_p11 = scmp.lt.s32.totalorder (!%p204_p9), %s1311_s22, 1  ;;  %v382_v8 = vlaneseq (!%p204_p9)  ;;  %vm564_vm1 = vcmask (!%p204_p9), 1041409  }
   0xe   : > { %207 = sbr.rel (%p204_p9) target bundleno = 1072 (0x430), region = 36  ;;  %p240_p10 = scmp.lt.s32.totalorder (!%p204_p9), %s1064_s7, 15  ;;  %1089 = vmatprep.subr.bf16.mxu0 (!%p204_p9), %v1148_v0  ;;  %1101 = vmatprep.subr.bf16.mxu1 (!%p204_p9), %v1148_v0  ;;  %v1257_v6 = vmov (!%p204_p9), 1966171168   ;;  %v1078_v51 = vld [vmem:[%s1572_s3] ss:$0 sm:$0xff] (!%p204_p9) }
   0xf   : > { %1090 = vmatpush3.bf16.msra.mxu0 (!%p204_p9), %v1148_v0  ;;  %1103 = vmatpush3.bf16.msra.mxu1 (!%p204_p9), %v1148_v0  ;;  %v380_v7 = vunpack.c.l.s4 (!%p204_p9), %v1257_v6  ;;  %v1370_v10 = vshrl.u32 (!%p204_p9), %v382_v8, 7  ;;  %vm566_vm2 = vcmask (!%p204_p9), 1042434   ;;  %vm568_vm3 = vcmask (!%p204_p9), 1043459   ;;  %s230_s8 = sand.u32 (!%p204_p9), 1, %s1247_s19   ;;  %s1259_s17 = smov (!%p204_p9), [#allocation2]  }
  0x10   : > { %1091 = vmatprep.subr.bf16.mxu0 (!%p204_p9), %v1149_v1  ;;  %1102 = vmatprep.subr.bf16.mxu1 (!%p204_p9), %v1149_v1  ;;  %vm570_vm4 = vcmask (!%p204_p9), 1044484   ;;  %vm572_vm5 = vcmask (!%p204_p9), 1045509   ;;  %vm574_vm6 = vcmask (!%p204_p9), 1046534   ;;  %vm576_vm7 = vcmask (!%p204_p9), 1047559   ;;  %s1063_s9 = sshll.u32 (!%p204_p9), %s230_s8, 3 }
  0x11   : > { %v381_v9 = vunpack.c.0.s8 (!%p204_p9), %v380_v7  ;;  %v1379_v21 = vsub.s32 (!%p204_p9), 0, %v1370_v10  ;;  %vm579_vm8 = vcmask (!%p204_p9), 64512   ;;  %s232_s11 = scalar_lea.vmem (!%p204_p9), [#allocation2], %s1063_s9 }
  0x12   : > { %s961_s12 = sshll.u32 (!%p204_p9), %s232_s11, 4  ;;  %s1527_s12 = int_to_ptr.vmem [resolvable:$true] %s961_s12 }
  0x13   : > { %1092 = vmatpush3.bf16.msra.mxu0 (!%p204_p9), %v1149_v1  ;;  %1104 = vmatpush3.bf16.msra.mxu1 (!%p204_p9), %v1149_v1  ;;  %v384_v11 = vsub.s32 (!%p204_p9), %v381_v9, %v1370_v10  ;;  %s1193_s16 = scalar_lea.vmem (!%p204_p9), %s1527_s12, 128 }
  0x14   : > { %p1194_p12 = scmp.ne.s32.totalorder (!%p204_p9), %s1527_s12, %s1193_s16 }
  0x15   : > { %s1582_s7 = smov (!%p240_p10, %s1064_s7), 15 }
  0x16   : > { %s1065_s10 = sshll.u32 %s1582_s7, 2  ;;  %p1195_p13 = pnand %p1194_p12, %p1328_p5 }
  0x17   : > { %s243_s13 = scalar_lea.vmem %s1569_s0, %s1065_s10  ;;  %s1080_s10 = sshll.u32 %s1311_s22, 7 }
  0x18   : > { %v1348_v2 = vld [vmem:[%s243_s13] sm:$0xff]   ;;  %v1350_v3 = vld [vmem:[%s243_s13 + $0x8] sm:$0xff]   ;;  %v1352_v4 = vld [vmem:[%s243_s13 + $0x10] sm:$0xff]   ;;  %s1366_s14 = scalar_select %p245_p11, %s1311_s22, 1 }
  0x19   : > { %v1354_v5 = vld [vmem:[%s243_s13 + $0x18] sm:$0xff]   ;;  %1093 = vmatprep.mubr.msk.bf16.mxu0 %vm298_vm0, %v1348_v2  ;;  %1097 = vmatprep.mubr.msk.bf16.mxu1 %vm298_vm0, %v1352_v4  ;;  %s944_s22 = scalar_lea.sflag [#allocation3], %s230_s8  ;;  %p1196_p0 = pneg %p1195_p13 }
  0x1a   : > { %1094 = vmatmul.mubr.msk.bf16.vlgmr.msra.gmra.mrb[0].mxu0 %vm298_vm0, %v1350_v3  ;;  %1098 = vmatmul.mubr.msk.bf16.vlgmr.msra.gmra.mrb[0].mxu1 %vm298_vm0, %v1354_v5  ;;  %s1066_s15 = sshll.u32 %s1366_s14, 3 }
  0x1b   : > { %s248_s23 = scalar_lea.vmem %s1570_s1, %s1066_s15  ;;  %s252_s7 = scalar_lea.vmem %s1574_s5, %s1066_s15 }
  0x1c   : > { %v376_v12 = vld [vmem:[%s248_s23] sm:$0xff]  ;;  %s1525_s15 = scalar_lea.hbm %s1573_s4, %s1080_s10  ;;  %s1197_s23 = sshll.u32 %s1259_s17, 4  ;;  %s1198_s23 = int_to_ptr.vmem [resolvable:$false] %s1197_s23 }
  0x1d   : > { %v385_v13 = vrot.slane %v376_v12, %v384_v11  ;;  %v378_v14 = vcombine.high %v376_v12, %v376_v12  ;;  %s1199_s25 = scalar_lea.vmem %s1198_s23, 256  ;;  %p1200_p1 = scmp.lt.s32.totalorder %s1527_s12, %s1198_s23 }
  0x1e   : > { %p1201_p2 = scmp.lt.s32.totalorder %s1199_s25, %s1193_s16 }
  0x1f   : > { %v393_v15 = vcombine.high %v385_v13, %v385_v13  ;;  %v392_v16 = vrot.slane %v378_v14, %v384_v11  ;;  %v401_v17 = vrot.slane %v385_v13, %v384_v11 }
  0x20   : > { %p1202_p3 = por %p1201_p2, %p1200_p1 }
  0x21   : > { %v415_v18 = vrot.slane %v393_v15, %v384_v11  ;;  %v394_v19 = vcombine.high %v392_v16, %v392_v16  ;;  %v423_v20 = vcombine.high %v401_v17, %v401_v17  ;;  %v408_v24 = vrot.slane %v392_v16, %v384_v11 }
  0x22   : > { %v430_v26 = vrot.slane %v401_v17, %v1379_v21  ;;  %p1203_p4 = pnand %p1202_p3, %p1196_p0 }
  0x23   : > { %v425_v22 = vcombine.high %v415_v18, %v415_v18  ;;  %v422_v23 = vrot.slane %v394_v19, %v384_v11  ;;  %v438_v25 = vrot.slane %v423_v20, %v1379_v21  ;;  %v434_v30 = vrot.slane %v415_v18, %v1379_v21 }
  0x24   : > { %v424_v31 = vcombine.high %v408_v24, %v408_v24  ;;  %v446_v32 = vrot.slane %v408_v24, %v1379_v21  ;;  %v531_v18 = vand.u32 127, %v382_v8 }
  0x25   : > { %v442_v27 = vrot.slane %v425_v22, %v1379_v21  ;;  %v426_v28 = vcombine.high %v422_v23, %v422_v23  ;;  %v450_v39 = vrot.slane %v422_v23, %v1379_v21 }
  0x26   : > { %v454_v45 = vrot.slane %v424_v31, %v1379_v21  ;;  %v1402_v22 = vsub.s32 %v531_v18, %v1370_v10 }
  0x27   : > { %v458_v43 = vrot.slane %v426_v28, %v1379_v21 }
  0xed   : > { %v1095_v29 = vpop.f32.mrb[0].mxu0  ;;  %v1099_v35 = vpop.f32.mrb[0].mxu1 }
  0xee   : > { %v469_v33 = vadd.f32 %v1095_v29, %v438_v25  ;;  %v345_v34 = vpop.f32.mrb[1].mxu0  ;;  %v361_v38 = vpop.f32.mrb[1].mxu1  ;;  %v473_v50 = vadd.f32 %v1099_v35, %v454_v45  ;;  %v590_v45 = vsub.s32 1, %v1370_v10 }
  0xef   : > { %v467_v36 = vadd.f32 %v430_v26, %v345_v34  ;;  %v1096_v37 = vpop.f32.mrb[2].mxu0  ;;  %v1100_v42 = vpop.f32.mrb[2].mxu1  ;;  %v471_v46 = vadd.f32 %v446_v32, %v361_v38 }
  0xf0   : > { %1159 = vtanh.f32 %v469_v33  ;;  %v470_v40 = vadd.f32 %v1096_v37, %v442_v27  ;;  %v348_v41 = vpop.f32.mrb[3].mxu0  ;;  %v364_v47 = vpop.f32.mrb[3].mxu1  ;;  %v474_v49 = vadd.f32 %v1100_v42, %v458_v43 }
  0xf1   : > { %1161 = vtanh.f32 %v467_v36  ;;  %v468_v44 = vadd.f32 %v434_v30, %v348_v41  ;;  %v472_v48 = vadd.f32 %v450_v39, %v364_v47  ;;  %v598_v47 = vsub.s32 3, %v1370_v10 }
  0xf2   : > { %1163 = vtanh.f32 %v470_v40 }
  0xf3   : > { %1165 = vtanh.f32 %v468_v44  ;;  %v1258_v44 = vmov 0  }
  0xf4   : > { %1167 = vtanh.f32 %v471_v46  ;;  %1147 = vset.pattern.permute.xlu0 %v1258_v44  ;;  %1146 = vset.pattern.permute.xlu1 %v1258_v44  ;;  %v594_v46 = vsub.s32 2, %v1370_v10 }
  0xf5   : > { %1169 = vtanh.f32 %v472_v48 }
  0xf6   : > { %1171 = vtanh.f32 %v474_v49 }
  0xf7   : > { %1173 = vtanh.f32 %v473_v50 }
  0xfa   : > { %v1160_v52 = vpop.eup %1159 }
  0xfb   : > { %v1162_v53 = vpop.eup %1161  ;;  %v492_v54 = vmul.f32 %v1160_v52, %v1078_v51  ;;  %v602_v52 = vsub.s32 4, %v1370_v10 }
  0xfc   : > { %v1164_v55 = vpop.eup %1163  ;;  %v490_v56 = vmul.f32 %v1162_v53, %v1078_v51 }
  0xfd   : > { %v1166_v57 = vpop.eup %1165  ;;  %v504_v58 = vsel %vm298_vm0, %v492_v54, 0.0  ;;  %v493_v59 = vmul.f32 %v1164_v55, %v1078_v51 }
  0xfe   : > { %505 = vadd.xlane.f32.xlu1 %v504_v58  ;;  %v498_v60 = vsel %vm298_vm0, %v490_v56, 0.0  ;;  %v491_v61 = vmul.f32 %v1166_v57, %v1078_v51  ;;  %v1168_v62 = vpop.eup %1167 }
  0xff   : > { %499 = vadd.xlane.f32.xlu0 %v498_v60  ;;  %v1170_v63 = vpop.eup %1169  ;;  %v507_v0 = vsel %vm298_vm0, %v493_v59, 0.0  ;;  %v494_v9 = vmul.f32 %v1168_v62, %v1078_v51  ;;  %v606_v59 = vsub.s32 5, %v1370_v10 }
 0x100   : > { %v1172_v1 = vpop.eup %1171  ;;  %v501_v6 = vsel %vm298_vm0, %v491_v61, 0.0  ;;  %v495_v7 = vmul.f32 %v1170_v63, %v1078_v51  ;;  %v610_v63 = vsub.s32 6, %v1370_v10 }
 0x101   : > { %v1174_v11 = vpop.eup %1173  ;;  %v497_v13 = vmul.f32 %v1172_v1, %v1078_v51  ;;  %v510_v14 = vsel %vm298_vm0, %v494_v9, 0.0 }
 0x102   : > { %508 = vadd.xlane.f32.xlu1 %v507_v0  ;;  %v513_v12 = vsel %vm298_vm0, %v495_v7, 0.0  ;;  %v496_v15 = vmul.f32 %v1174_v11, %v1078_v51  ;;  %v614_v7 = vsub.s32 7, %v1370_v10 }
 0x103   : > { %502 = vadd.xlane.f32.xlu0 %v501_v6  ;;  %v519_v16 = vsel %vm298_vm0, %v497_v13, 0.0 }
 0x104   : > { %v516_v17 = vsel %vm298_vm0, %v496_v15, 0.0 }
 0x106   : > { %514 = vadd.xlane.f32.xlu1 %v513_v12 }
 0x107   : > { %511 = vadd.xlane.f32.xlu0 %v510_v14 }
 0x10a   : > { %520 = vadd.xlane.f32.xlu1 %v519_v16 }
 0x10b   : > { %517 = vadd.xlane.f32.xlu0 %v516_v17 }
 0x18b   : > { %v506_v19 = vpop.xlane.xlu1 %505 }
 0x18c   : > { %v500_v20 = vpop.xlane.xlu0 %499  ;;  %v543_v27 = vrot.slane %v506_v19, %v1402_v22 }
 0x18d   : > { %v535_v25 = vrot.slane %v500_v20, %v1402_v22 }
 0x18f   : > { %v509_v23 = vpop.xlane.xlu1 %508 }
 0x190   : > { %v503_v24 = vpop.xlane.xlu0 %502  ;;  %v547_v28 = vrot.slane %v509_v23, %v1402_v22 }
 0x191   : > { %v539_v26 = vrot.slane %v503_v24, %v1402_v22 }
 0x193   : > { %v565_v8 = vsel %vm564_vm1, %v539_v26, %v535_v25  ;;  %v515_v29 = vpop.xlane.xlu1 %514 }
 0x194   : > { %v567_v30 = vsel %vm566_vm2, %v543_v27, %v565_v8  ;;  %v512_v31 = vpop.xlane.xlu0 %511  ;;  %v555_v36 = vrot.slane %v515_v29, %v1402_v22 }
 0x195   : > { %v569_v32 = vsel %vm568_vm3, %v547_v28, %v567_v30  ;;  %v551_v33 = vrot.slane %v512_v31, %v1402_v22 }
 0x197   : > { %v571_v34 = vsel %vm570_vm4, %v551_v33, %v569_v32  ;;  %v1413_v35 = vpop.xlane.xlu1 %520 }
 0x198   : > { %v518_v37 = vpop.xlane.xlu0 %517  ;;  %v563_v39 = vrot.slane %v1413_v35, %v1402_v22  ;;  %v573_v40 = vsel %vm572_vm5, %v555_v36, %v571_v34 }
 0x199   : > { %v559_v38 = vrot.slane %v518_v37, %v1402_v22 }
 0x19b   : > { %v575_v41 = vsel %vm574_vm6, %v559_v38, %v573_v40 }
 0x19c   : > { %v577_v42 = vsel %vm576_vm7, %v563_v39, %v575_v41 }
 0x19d   : > { %v580_v43 = vsel %vm579_vm8, %v577_v42, -inf }
 0x19e   : > { %581 = vmax.xlane.f32.xlu0 %v580_v43 }
 0x22b   : > { %v582_v48 = vpop.xlane.xlu0 %581 }
 0x22c   : > { %v587_v49 = vrot.slane %v582_v48, %v1379_v21  ;;  %v591_v50 = vrot.slane %v582_v48, %v590_v45  ;;  %v595_v51 = vrot.slane %v582_v48, %v594_v46  ;;  %v599_v53 = vrot.slane %v582_v48, %v598_v47 }
 0x22d   : > { %v603_v60 = vrot.slane %v582_v48, %v602_v52  ;;  %v607_v0 = vrot.slane %v582_v48, %v606_v59  ;;  %v611_v9 = vrot.slane %v582_v48, %v610_v63  ;;  %v615_v15 = vrot.slane %v582_v48, %v614_v7 }
 0x22e   : > { %v624_v54 = vsub.f32 %v500_v20, %v587_v49  ;;  %v625_v55 = vsub.f32 %v503_v24, %v591_v50  ;;  %v626_v56 = vsub.f32 %v506_v19, %v595_v51  ;;  %v627_v61 = vsub.f32 %v509_v23, %v599_v53 }
 0x22f   : > { %v628_v1 = vsub.f32 %v512_v31, %v603_v60  ;;  %v629_v11 = vsub.f32 %v515_v29, %v607_v0  ;;  %v630_v16 = vsub.f32 %v518_v37, %v611_v9  ;;  %v631_v19 = vsub.f32 %v1413_v35, %v615_v15 }
 0x230   : > { %v632_v57 = vmul.f32 1.442695, %v624_v54  ;;  %v634_v58 = vmul.f32 1.442695, %v625_v55  ;;  %v636_v62 = vmul.f32 1.442695, %v626_v56 }
 0x231   : > { %v638_v6 = vmul.f32 1.442695, %v627_v61  ;;  %v640_v12 = vmul.f32 1.442695, %v628_v1  ;;  %v642_v17 = vmul.f32 1.442695, %v629_v11 }
 0x232   : > { %1175 = vpow2.f32 %v632_v57  ;;  %v644_v20 = vmul.f32 1.442695, %v630_v16  ;;  %v646_v24 = vmul.f32 1.442695, %v631_v19  ;;  %v774_v16 = vunpack.c.h.bf16 %v1348_v2 }
 0x233   : > { %1177 = vpow2.f32 %v634_v58 }
 0x234   : > { %1179 = vpow2.f32 %v636_v62 }
 0x235   : > { %1181 = vpow2.f32 %v638_v6 }
 0x236   : > { %1183 = vpow2.f32 %v640_v12 }
 0x237   : > { %1185 = vpow2.f32 %v642_v17 }
 0x238   : > { %1187 = vpow2.f32 %v644_v20 }
 0x239   : > { %1189 = vpow2.f32 %v646_v24 }
 0x23c   : > { %v1176_v13 = vpop.eup %1175 }
 0x23d   : > { %v1178_v14 = vpop.eup %1177  ;;  %657 = vperm.xlu1 %1146, %v1176_v13  }
 0x23e   : > { %660 = vperm.xlu0 %1147, %v1178_v14   ;;  %v1180_v18 = vpop.eup %1179 }
 0x23f   : > { %v1182_v23 = vpop.eup %1181 }
 0x240   : > { %v1184_v25 = vpop.eup %1183 }
 0x241   : > { %663 = vperm.xlu1 %1146, %v1180_v18   ;;  %v1186_v26 = vpop.eup %1185 }
 0x242   : > { %v1188_v27 = vpop.eup %1187 }
 0x243   : > { %v1190_v28 = vpop.eup %1189 }
 0x245   : > { %666 = vperm.xlu1 %1146, %v1182_v23  }
 0x249   : > { %669 = vperm.xlu1 %1146, %v1184_v25  }
 0x24d   : > { %672 = vperm.xlu1 %1146, %v1186_v26  }
 0x251   : > { %675 = vperm.xlu1 %1146, %v1188_v27  }
 0x255   : > { %678 = vperm.xlu1 %1146, %v1190_v28  }
 0x2bc   : > { %v658_v8 = vpop.permute.xlu1 %657 }
 0x2bd   : > { %v661_v32 = vpop.permute.xlu0 %660  ;;  %v683_v35 = vrot.slane %v658_v8, %v1402_v22 }
 0x2be   : > { %v687_v34 = vrot.slane %v661_v32, %v1402_v22 }
 0x2c0   : > { %v664_v29 = vpop.permute.xlu1 %663  ;;  %v712_v40 = vsel %vm564_vm1, %v687_v34, %v683_v35 }
 0x2c1   : > { %v691_v36 = vrot.slane %v664_v29, %v1402_v22 }
 0x2c3   : > { %v713_v42 = vsel %vm566_vm2, %v691_v36, %v712_v40 }
 0x2c4   : > { %v667_v30 = vpop.permute.xlu1 %666 }
 0x2c5   : > { %v695_v37 = vrot.slane %v667_v30, %v1402_v22  ;;  %v777_v30 = vunpack.c.l.bf16 %v1352_v4 }
 0x2c7   : > { %v714_v44 = vsel %vm568_vm3, %v695_v37, %v713_v42 }
 0x2c8   : > { %v670_v31 = vpop.permute.xlu1 %669 }
 0x2c9   : > { %v699_v38 = vrot.slane %v670_v31, %v1402_v22 }
 0x2cb   : > { %v715_v48 = vsel %vm570_vm4, %v699_v38, %v714_v44 }
 0x2cc   : > { %v673_v33 = vpop.permute.xlu1 %672 }
 0x2cd   : > { %v703_v41 = vrot.slane %v673_v33, %v1402_v22 }
 0x2cf   : > { %v716_v50 = vsel %vm572_vm5, %v703_v41, %v715_v48 }
 0x2d0   : > { %v676_v39 = vpop.permute.xlu1 %675 }
 0x2d1   : > { %v707_v43 = vrot.slane %v676_v39, %v1402_v22  ;;  %v778_v39 = vunpack.c.h.bf16 %v1352_v4  ;;  %v779_v4 = vunpack.c.l.bf16 %v1354_v5 }
 0x2d3   : > { %v717_v53 = vsel %vm574_vm6, %v707_v43, %v716_v50 }
 0x2d4   : > { %v679_v49 = vpop.permute.xlu1 %678 }
 0x2d5   : > { %v711_v51 = vrot.slane %v679_v49, %v1402_v22 }
 0x2d7   : > { %v718_v54 = vsel %vm576_vm7, %v711_v51, %v717_v53 }
 0x2d8   : > { %v720_v55 = vsel %vm579_vm8, %v718_v54, 0.0 }
 0x2d9   : > { %721 = vadd.xlane.f32.xlu1 %v720_v55 }
 0x366   : > { %v722_v56 = vpop.xlane.xlu1 %721 }
 0x367   : > { %1191 = vrcp.f32 %v722_v56 }
 0x371   : > { %v1192_v57 = vpop.eup %1191 }
 0x372   : > { %v728_v58 = vrot.slane %v1192_v57, %v1379_v21  ;;  %v732_v61 = vrot.slane %v1192_v57, %v590_v45  ;;  %v736_v0 = vrot.slane %v1192_v57, %v594_v46  ;;  %v740_v6 = vrot.slane %v1192_v57, %v598_v47 }
 0x373   : > { %v744_v11 = vrot.slane %v1192_v57, %v602_v52  ;;  %v748_v45 = vrot.slane %v1192_v57, %v606_v59  ;;  %v752_v46 = vrot.slane %v1192_v57, %v610_v63  ;;  %v756_v47 = vrot.slane %v1192_v57, %v614_v7 }
 0x374   : > { %v765_v60 = vmul.f32 %v1176_v13, %v728_v58  ;;  %v766_v62 = vmul.f32 %v1178_v14, %v732_v61  ;;  %v767_v1 = vmul.f32 %v1180_v18, %v736_v0  ;;  %v768_v9 = vmul.f32 %v1182_v23, %v740_v6 }
 0x375   : > { %v769_v21 = vmul.f32 %v1184_v25, %v744_v11  ;;  %v770_v12 = vmul.f32 %v1186_v26, %v748_v45  ;;  %v771_v13 = vmul.f32 %v1188_v27, %v752_v46  ;;  %v772_v14 = vmul.f32 %v1190_v28, %v756_v47 }
 0x376   : > { %783 = vperm.xlu0 %1147, %v765_v60   ;;  %v773_v52 = vunpack.c.l.bf16 %v1348_v2  ;;  %v775_v63 = vunpack.c.l.bf16 %v1350_v3  ;;  %v776_v26 = vunpack.c.h.bf16 %v1350_v3 }
 0x37a   : > { %788 = vperm.xlu0 %1147, %v766_v62  }
 0x37e   : > { %793 = vperm.xlu0 %1147, %v767_v1  }
 0x382   : > { %798 = vperm.xlu0 %1147, %v768_v9   ;;  %v780_v9 = vunpack.c.h.bf16 %v1354_v5 }
 0x386   : > { %803 = vperm.xlu0 %1147, %v769_v21  }
 0x38a   : > { %808 = vperm.xlu0 %1147, %v770_v12  }
 0x38e   : > { %813 = vperm.xlu0 %1147, %v771_v13  }
 0x392   : > { %818 = vperm.xlu0 %1147, %v772_v14  }
 0x3f5   : > { %v784_v15 = vpop.permute.xlu0 %783 }
 0x3f6   : > { %v821_v17 = vmul.f32 %v784_v15, %v773_v52  ;;  %v905_v49 = vrot.slane %v784_v15, %v1402_v22 }
 0x3f8   : > { %v829_v59 = vsel %vm298_vm0, %v821_v17, 0.0 }
 0x3f9   : > { %v789_v18 = vpop.permute.xlu0 %788  ;;  %v830_v19 = vrot.slane %v829_v59, 4 }
 0x3fa   : > { %v822_v20 = vmul.f32 %v789_v18, %v774_v16  ;;  %v909_v41 = vrot.slane %v789_v18, %v1402_v22 }
 0x3fb   : > { %v831_v24 = vadd.f32 %v830_v19, %v829_v59 }
 0x3fc   : > { %v836_v23 = vsel %vm298_vm0, %v822_v20, 0.0  ;;  %v934_v58 = vsel %vm564_vm1, %v909_v41, %v905_v49 }
 0x3fd   : > { %v837_v10 = vrot.slane %v836_v23, 4  ;;  %v794_v7 = vpop.permute.xlu0 %793  ;;  %v832_v31 = vrot.slane %v831_v24, 2 }
 0x3fe   : > { %v823_v25 = vmul.f32 %v794_v7, %v775_v63  ;;  %v913_v44 = vrot.slane %v794_v7, %v1402_v22 }
 0x3ff   : > { %v838_v27 = vadd.f32 %v837_v10, %v836_v23  ;;  %v833_v3 = vadd.f32 %v832_v31, %v831_v24 }
 0x400   : > { %v843_v28 = vsel %vm298_vm0, %v823_v25, 0.0  ;;  %v935_v0 = vsel %vm566_vm2, %v913_v44, %v934_v58 }
 0x401   : > { %v839_v2 = vrot.slane %v838_v27, 2  ;;  %v844_v8 = vrot.slane %v843_v28, 4  ;;  %v799_v29 = vpop.permute.xlu0 %798  ;;  %v834_v55 = vrot.slane %v833_v3, 1 }
 0x402   : > { %v824_v32 = vmul.f32 %v799_v29, %v776_v26  ;;  %v917_v61 = vrot.slane %v799_v29, %v1402_v22 }
 0x403   : > { %v845_v33 = vadd.f32 %v844_v8, %v843_v28  ;;  %v840_v35 = vadd.f32 %v839_v2, %v838_v27  ;;  %v835_v13 = vadd.f32 %v834_v55, %v833_v3 }
 0x404   : > { %v850_v34 = vsel %vm298_vm0, %v824_v32, 0.0  ;;  %v936_v15 = vsel %vm568_vm3, %v917_v61, %v935_v0 }
 0x405   : > { %v846_v36 = vrot.slane %v845_v33, 2  ;;  %v851_v37 = vrot.slane %v850_v34, 4  ;;  %v804_v38 = vpop.permute.xlu0 %803  ;;  %v841_v50 = vrot.slane %v840_v35, 1 }
 0x406   : > { %v825_v40 = vmul.f32 %v804_v38, %v777_v30  ;;  %v921_v1 = vrot.slane %v804_v38, %v1402_v22 }
 0x407   : > { %v847_v42 = vadd.f32 %v846_v36, %v845_v33  ;;  %v852_v43 = vadd.f32 %v851_v37, %v850_v34  ;;  %v842_v11 = vadd.f32 %v841_v50, %v840_v35 }
 0x408   : > { %v857_v48 = vsel %vm298_vm0, %v825_v40, 0.0  ;;  %v937_v5 = vsel %vm570_vm4, %v921_v1, %v936_v15 }
 0x409   : > { %v853_v51 = vrot.slane %v852_v43, 2  ;;  %v858_v53 = vrot.slane %v857_v48, 4  ;;  %v809_v54 = vpop.permute.xlu0 %808  ;;  %v848_v56 = vrot.slane %v847_v42, 1  ;;  %v893_v20 = vsel %vm564_vm1, %v842_v11, %v835_v13 }
 0x40a   : > { %v826_v57 = vmul.f32 %v809_v54, %v778_v39  ;;  %v925_v14 = vrot.slane %v809_v54, %v1402_v22 }
 0x40b   : > { %v854_v60 = vadd.f32 %v853_v51, %v852_v43  ;;  %v859_v62 = vadd.f32 %v858_v53, %v857_v48  ;;  %v849_v47 = vadd.f32 %v848_v56, %v847_v42 }
 0x40c   : > { %v864_v6 = vsel %vm298_vm0, %v826_v57, 0.0  ;;  %v938_v25 = vsel %vm572_vm5, %v925_v14, %v937_v5 }
 0x40d   : > { %v855_v21 = vrot.slane %v854_v60, 1  ;;  %v860_v45 = vrot.slane %v859_v62, 2  ;;  %v865_v12 = vrot.slane %v864_v6, 4  ;;  %v814_v46 = vpop.permute.xlu0 %813  ;;  %v894_v24 = vsel %vm566_vm2, %v849_v47, %v893_v20 }
 0x40e   : > { %v827_v52 = vmul.f32 %v814_v46, %v779_v4  ;;  %v929_v59 = vrot.slane %v814_v46, %v1402_v22 }
 0x40f   : > { %v861_v16 = vadd.f32 %v860_v45, %v859_v62  ;;  %v866_v17 = vadd.f32 %v865_v12, %v864_v6  ;;  %v856_v18 = vadd.f32 %v855_v21, %v854_v60 }
 0x410   : > { %v871_v19 = vsel %vm298_vm0, %v827_v52, 0.0  ;;  %v939_v29 = vsel %vm574_vm6, %v929_v59, %v938_v25 }
 0x411   : > { %v862_v63 = vrot.slane %v861_v16, 1  ;;  %v867_v23 = vrot.slane %v866_v17, 2  ;;  %v872_v10 = vrot.slane %v871_v19, 4  ;;  %v819_v7 = vpop.permute.xlu0 %818  ;;  %v895_v30 = vsel %vm568_vm3, %v856_v18, %v894_v24 }
 0x412   : > { %v828_v26 = vmul.f32 %v819_v7, %v780_v9  ;;  %v933_v27 = vrot.slane %v819_v7, %v1402_v22 }
 0x413   : > { %v863_v28 = vadd.f32 %v862_v63, %v861_v16  ;;  %v868_v2 = vadd.f32 %v867_v23, %v866_v17  ;;  %v873_v8 = vadd.f32 %v872_v10, %v871_v19 }
 0x414   : > { %v878_v31 = vsel %vm298_vm0, %v828_v26, 0.0  ;;  %v940_v32 = vsel %vm576_vm7, %v933_v27, %v939_v29 }
 0x415   : > { %v869_v33 = vrot.slane %v868_v2, 1  ;;  %v874_v34 = vrot.slane %v873_v8, 2  ;;  %v879_v35 = vrot.slane %v878_v31, 4  ;;  %942 = vst.msk [vmem:[%s252_s7] sm:$0xff] %vm579_vm8, %v940_v32  ;;  %v896_v22 = vsel %vm570_vm4, %v863_v28, %v895_v30 }
 0x417   : > { %v870_v36 = vadd.f32 %v869_v33, %v868_v2  ;;  %v875_v37 = vadd.f32 %v874_v34, %v873_v8  ;;  %v880_v38 = vadd.f32 %v879_v35, %v878_v31 }
 0x419   : > { %v876_v39 = vrot.slane %v875_v37, 1  ;;  %v881_v3 = vrot.slane %v880_v38, 2  ;;  %v897_v40 = vsel %vm572_vm5, %v870_v36, %v896_v22 }
 0x41b   : > { %v882_v41 = vadd.f32 %v881_v3, %v880_v38  ;;  %v877_v42 = vadd.f32 %v876_v39, %v875_v37 }
 0x41d   : > { %v883_v43 = vrot.slane %v882_v41, 1  ;;  %v898_v48 = vsel %vm574_vm6, %v877_v42, %v897_v40 }
 0x41f   : > { %v884_v44 = vadd.f32 %v883_v43, %v882_v41 }
 0x421   : > { %v899_v49 = vsel %vm576_vm7, %v884_v44, %v898_v48 }
 0x422   : > { %901 = vst.msk [vmem:[%s232_s11] sm:$0xff] %vm298_vm0, %v899_v49 }
 0x423   : > { %1206 = shalt.err (!%p1203_p4)
}
 0x424   : > { %s1207_s26 = scalar_lea.hbm %s1525_s15, 128  ;;  %s1211_s7 = scalar_lea.hbm %s1573_s4, 256 }
 0x425   : > { %p1208_p7 = scmp.ne.s32.totalorder %s1525_s15, %s1207_s26  ;;  %p1212_p10 = scmp.lt.u32.totalorder %s1525_s15, %s1573_s4 }
 0x426   : > { %p1213_p11 = scmp.lt.u32.totalorder %s1211_s7, %s1207_s26  ;;  %p1215_p13 = scmp.lt.u32.totalorder %s1207_s26, %s1525_s15 }
 0x427   : > { %p1209_p8 = pnand %p1208_p7, %p1328_p5 }
 0x428   : > { %p1214_p12 = por %p1213_p11, %p1212_p10 }
 0x429   : > { %p1210_p9 = pneg %p1209_p8 }
 0x42a   : > { %p1216_p0 = por %p1215_p13, %p1214_p12 }
 0x42c   : > { %p1217_p1 = pnand %p1216_p0, %p1210_p9 }
 0x42e   : > { %1220 = shalt.err (!%p1217_p1)
}
 0x42f   : > { %1105 = dma.vmem_to_hbm [thread:$0]  (%p1328_p5), %s1527_s12, 128, %s1525_s15, %s944_s22  }
 0x430 PF: > { %p1111_p2 = scmp.ge.s32.totalorder %s1255_s21, 2  ;;  %s976_s10 = sand.u32 1, %s1243_s18  }
 0x431   : > { %s977_s11 = scalar_lea.sflag [#allocation3], %s976_s10 }
 0x432   : > { %p1108_p3 = pnand %p1111_p2, %p1332_p6 }
 0x434   : > { %1238 = dma.done.wait (!%p1108_p3), %s977_s11, 128  }
 0x435   : > { %1240 = vsyncadd (!%p1108_p3), %s977_s11, 4294967168  ;;  %p16_p4 = scmp.ge.s32.totalorder %s1315_s24, 4   ;;  %s1577_s18 = smov %s1247_s19 }
 0x436   : > { %s1578_s19 = smov %s1251_s20  ;;  %s1579_s20 = smov %s1326_s27 }
 0x437   : > { %s1580_s21 = smov %s1315_s24  ;;  %18 = sbr.rel (!%p16_p4) target bundleno = 3 (0x3), region = 86 }
 0x43e   :  { %989 = vsyncpa [#allocation3], 1 }
 0x43f   :  { %991 = vsyncpa [#allocation3 + $0x1], 1 }

</bundles_post_ra>
